<compile_context>
chip_gen: v6e
topology: v6e:2x2x1
jax: 0.10.0
libtpu: 0.0.40
codegen_flags: <defaults>
</compile_context>

<pallas_src>
import functools

import jax
import jax.numpy as jnp
from jax import lax
from jax.experimental import pallas as pl
from jax.experimental.pallas import tpu as pltpu


_MARGIN = 128   # lane-aligned flat-axis margin so all 9 tap slices stay in-bounds
_LANE = 128


def _round_up(n, m):
    return (n + m - 1) // m * m


def _pcam_fused_kernel(x_ref, w5c_ref, b5c_ref, w52_ref, b52_ref,
                       w8_ref, b8_ref, mask_ref, gamma_ref,
                       o_ref, feat_ref, *, H, W, np_pad):
    Wp = W + 2
    cin = x_ref.shape[0]                       # in_channels
    ci = w5c_ref.shape[0]                      # inter_channels
    m_in = (x_ref.shape[1] - np_pad) // 2      # flat margin of the padded input
    m_f = (feat_ref.shape[1] - np_pad) // 2    # flat margin of the staging buffer

    def conv3x3(src_ref, w_ref, margin, c_in):
        """9 accumulated matmuls over constant-offset lane slices (no im2col)."""
        w = w_ref[...]                                       # (cout, 9*c_in) bf16
        acc = jnp.zeros((w.shape[0], np_pad), jnp.float32)
        for k in range(9):
            dy, dx = k // 3, k % 3
            start = margin + (dy - 1) * Wp + (dx - 1)
            tap = src_ref[:, start:start + np_pad]           # (c_in, np_pad) bf16
            acc = acc + jnp.dot(w[:, k * c_in:(k + 1) * c_in], tap,
                                preferred_element_type=jnp.float32)
        return acc

    # ---- conv5c: 3x3 conv (BN folded) + ReLU, masked to the valid interior ----
    a1 = conv3x3(x_ref, w5c_ref, m_in, cin)
    feat2 = jnp.maximum(a1 + b5c_ref[...], 0.0) * mask_ref[...]     # (ci, np_pad) f32

    # ---- CAM_Module (channel attention) ----
    f2 = feat2.astype(jnp.bfloat16)
    energy = lax.dot_general(f2, f2, (((1,), (1,)), ((), ())),
                             preferred_element_type=jnp.float32)    # (ci, ci) = X @ X^T
    # softmax(rowmax(E) - E) == exp(rowmin(E) - E) / sum : one reduction, exponent <= 0
    p = jnp.exp(jnp.min(energy, axis=-1, keepdims=True) - energy)
    attn = p * pl.reciprocal(jnp.sum(p, axis=-1, keepdims=True), approx=True)
    cam = jnp.dot(attn.astype(jnp.bfloat16), f2,
                  preferred_element_type=jnp.float32)               # (ci, np_pad)
    sc_feat = gamma_ref[0, 0] * cam + feat2                         # ring/extra cols stay 0

    # ---- stage sc_feat (bf16) with zeroed margins for the conv52 tap slices ----
    feat_ref[:, :m_f] = jnp.zeros((ci, m_f), jnp.bfloat16)
    feat_ref[:, m_f + np_pad:] = jnp.zeros((ci, m_f), jnp.bfloat16)
    feat_ref[:, m_f:m_f + np_pad] = sc_feat.astype(jnp.bfloat16)

    # ---- conv52: 3x3 conv (BN folded) + ReLU ----
    a2 = conv3x3(feat_ref, w52_ref, m_f, ci)
    sc_conv = jnp.maximum(a2 + b52_ref[...], 0.0)

    # ---- conv8: Dropout2d(0.1) is identity in eval mode; 1x1 conv + bias ----
    o_ref[...] = (jnp.dot(w8_ref[...], sc_conv.astype(jnp.bfloat16),
                          preferred_element_type=jnp.float32) + b8_ref[...])


def pcam_forward(x_nchw, params):
    B, Cin, H, W = x_nchw.shape
    Hp, Wp = H + 2, W + 2
    Np = Hp * Wp
    Np_pad = _round_up(Np, _LANE)          # lane-dense flat spatial width
    Nq = Np_pad + 2 * _MARGIN
    Ci = params["w5c"].shape[0]
    Co = params["w8"].shape[0]

    # zero-pad spatially ('same' 3x3 conv), flatten HW, pad the flat axis to a
    # lane multiple + out-of-bounds margins, cast the MXU operand to bf16.
    # TODO(synk): at production sizes do this staging inside the kernel to avoid
    # the extra padded copy of the input in HBM.
    xp = jnp.pad(x_nchw, ((0, 0), (0, 0), (1, 1), (1, 1))).reshape(B, Cin, Np)
    xp = jnp.pad(xp, ((0, 0), (0, 0), (_MARGIN, _MARGIN + Np_pad - Np)))
    xp = xp.astype(jnp.bfloat16)           # (B, Cin, Nq)

    # mask of valid (non padding-ring, non lane-pad) positions on the flat axis
    q = jnp.arange(Np_pad, dtype=jnp.int32)
    row, col = q // Wp, q % Wp
    mask = (((q < Np) & (row >= 1) & (row <= H) & (col >= 1) & (col <= W))
            .astype(jnp.float32).reshape(1, Np_pad))

    kernel = functools.partial(_pcam_fused_kernel, H=H, W=W, np_pad=Np_pad)
    out = pl.pallas_call(
        kernel,
        out_shape=jax.ShapeDtypeStruct((B, Co, Np_pad), jnp.float32),
        grid=(B,),
        in_specs=[
            pl.BlockSpec((None, Cin, Nq), lambda b: (b, 0, 0)),      # x (flat-padded, bf16)
            pl.BlockSpec((Ci, 9 * Cin), lambda b: (0, 0)),           # w5c (bf16)
            pl.BlockSpec((Ci, 1), lambda b: (0, 0)),                 # b5c (f32)
            pl.BlockSpec((Ci, 9 * Ci), lambda b: (0, 0)),            # w52 (bf16)
            pl.BlockSpec((Ci, 1), lambda b: (0, 0)),                 # b52 (f32)
            pl.BlockSpec((Co, Ci), lambda b: (0, 0)),                # w8  (bf16)
            pl.BlockSpec((Co, 1), lambda b: (0, 0)),                 # b8  (f32)
            pl.BlockSpec((1, Np_pad), lambda b: (0, 0)),             # valid mask
            pl.BlockSpec(memory_space=pltpu.MemorySpace.SMEM),       # gamma scalar
        ],
        out_specs=pl.BlockSpec((None, Co, Np_pad), lambda b: (b, 0, 0)),
        scratch_shapes=[
            pltpu.VMEM((Ci, Np_pad + 2 * _MARGIN), jnp.bfloat16),    # staged sc_feat
        ],
        compiler_params=pltpu.CompilerParams(
            dimension_semantics=("parallel",)),
    )(xp, params["w5c"], params["b5c"], params["w52"], params["b52"],
      params["w8"], params["b8"], mask, params["gamma_cam"])

    # drop the lane padding, un-flatten, crop the 3x3 padding ring: already NCHW
    return out[:, :, :Np].reshape(B, Co, Hp, Wp)[:, :, 1:H + 1, 1:W + 1]


# ------------------------- parameter construction -------------------------- #

def make_params(key, in_channels, out_channels):
    inter = in_channels // 4
    keys = jax.random.split(key, 12)
    eps = 1e-3  # BatchNorm2d eps=0.001

    def conv_bn(kw, kg, kb, km, kv, cin, cout):
        # torch Conv2d weight layout: (cout, cin, 3, 3), no bias; BN folded (eval).
        w = 0.1 * jax.random.normal(kw, (cout, cin, 3, 3), jnp.float32)
        bn_g = 1.0 + 0.1 * jax.random.normal(kg, (cout,), jnp.float32)
        bn_b = 0.1 * jax.random.normal(kb, (cout,), jnp.float32)
        bn_m = 0.1 * jax.random.normal(km, (cout,), jnp.float32)
        bn_v = 1.0 + 0.1 * jax.random.uniform(kv, (cout,), jnp.float32)
        scale = bn_g / jnp.sqrt(bn_v + eps)
        w_fold = w * scale[:, None, None, None]
        # reorder to (cout, 9*cin) with column index k*cin + ci, k = dy*3 + dx,
        # matching the in-kernel tap order; bf16 for the MXU.
        wmat = jnp.transpose(w_fold, (0, 2, 3, 1)).reshape(cout, 9 * cin)
        bias = (bn_b - bn_m * scale).reshape(cout, 1)
        return wmat.astype(jnp.bfloat16), bias

    w5c, b5c = conv_bn(*keys[0:5], in_channels, inter)
    w52, b52 = conv_bn(*keys[5:10], inter, inter)

    w8_t = 0.1 * jax.random.normal(keys[10], (out_channels, inter, 1, 1), jnp.float32)
    w8 = w8_t[:, :, 0, 0].astype(jnp.bfloat16)                       # (out, inter)
    b8 = 0.1 * jax.random.normal(keys[11], (out_channels,), jnp.float32)
    b8 = b8.reshape(out_channels, 1)

    # torch init for CAM gamma is 0 (CAM would be an identity residual);
    # use a deterministic nonzero value so the attention path is exercised.
    gamma_cam = jnp.full((1, 1), 0.5, jnp.float32)

    return dict(w5c=w5c, b5c=b5c, w52=w52, b52=b52,
                w8=w8, b8=b8, gamma_cam=gamma_cam)


# --------------------------------- main ------------------------------------ #

if __name__ == "__main__":
    key = jax.random.PRNGKey(0)
    kx, kp = jax.random.split(key)

    B, Cin, H, W = 2, 32, 16, 16   # in_channels=32 -> inter_channels=8
    Cout = 8

    x = jax.random.normal(kx, (B, Cin, H, W), jnp.float32)
    params = make_params(kp, Cin, Cout)

    fwd = jax.jit(functools.partial(pcam_forward, params=params))
    y = fwd(x)
    jax.block_until_ready(y)

    assert y.shape == (B, Cout, H, W), y.shape
    assert bool(jnp.all(jnp.isfinite(y)))
    print("KERNEL_OK")
</pallas_src>

<mosaic_0001>
module attributes {stable_mosaic.version = 11 : i64} {
  func.func @_pcam_fused_kernel(%arg0: i32, %arg1: memref<1x32x640xbf16, #tpu.memory_space<vmem>>, %arg2: memref<8x288xbf16, #tpu.memory_space<vmem>>, %arg3: memref<8x1xf32, #tpu.memory_space<vmem>>, %arg4: memref<8x72xbf16, #tpu.memory_space<vmem>>, %arg5: memref<8x1xf32, #tpu.memory_space<vmem>>, %arg6: memref<8x8xbf16, #tpu.memory_space<vmem>>, %arg7: memref<8x1xf32, #tpu.memory_space<vmem>>, %arg8: memref<1x384xf32, #tpu.memory_space<vmem>>, %arg9: memref<1x1xf32, #tpu.memory_space<smem>>, %arg10: memref<1x8x384xf32, #tpu.memory_space<vmem>>, %arg11: memref<8x640xbf16, #tpu.memory_space<vmem>>) attributes {dimension_semantics = [#tpu.dimension_semantics<parallel>], iteration_bounds = array<i64: 2>, scalar_prefetch = 0 : i64, scratch_operands = 1 : i64, tpu.core_type = #tpu.core_type<tc>, window_params = [{transform_indices = @transform_0, window_bounds = array<i64: 1, 32, 640>}, {pipeline_mode = #tpu.pipeline_mode<synchronous>, transform_indices = @transform_1, window_bounds = array<i64: 8, 288>}, {pipeline_mode = #tpu.pipeline_mode<synchronous>, transform_indices = @transform_2, window_bounds = array<i64: 8, 1>}, {pipeline_mode = #tpu.pipeline_mode<synchronous>, transform_indices = @transform_3, window_bounds = array<i64: 8, 72>}, {pipeline_mode = #tpu.pipeline_mode<synchronous>, transform_indices = @transform_4, window_bounds = array<i64: 8, 1>}, {pipeline_mode = #tpu.pipeline_mode<synchronous>, transform_indices = @transform_5, window_bounds = array<i64: 8, 8>}, {pipeline_mode = #tpu.pipeline_mode<synchronous>, transform_indices = @transform_6, window_bounds = array<i64: 8, 1>}, {pipeline_mode = #tpu.pipeline_mode<synchronous>, transform_indices = @transform_7, window_bounds = array<i64: 1, 384>}, {transform_indices = @transform_8, window_bounds = array<i64: 1, 1>}, {transform_indices = @transform_9, window_bounds = array<i64: 1, 8, 384>}]} {
    %c0 = arith.constant 0 : index
    %c0_0 = arith.constant 0 : index
    %0 = vector.load %arg2[%c0, %c0_0] : memref<8x288xbf16, #tpu.memory_space<vmem>>, vector<8x288xbf16>
    %cst = arith.constant 0.000000e+00 : f32
    %1 = vector.broadcast %cst : f32 to vector<8x384xf32>
    %c0_1 = arith.constant 0 : index
    %c0_2 = arith.constant 0 : index
    %c109 = arith.constant 109 : index
    %2 = vector.load %arg1[%c0_1, %c0_2, %c109] : memref<1x32x640xbf16, #tpu.memory_space<vmem>>, vector<1x32x384xbf16>
    %3 = vector.shape_cast %2 : vector<1x32x384xbf16> to vector<32x384xbf16>
    %4 = vector.extract_strided_slice %0 {offsets = [0, 0], sizes = [8, 32], strides = [1, 1]} : vector<8x288xbf16> to vector<8x32xbf16>
    %cst_3 = arith.constant dense<0.000000e+00> : vector<8x384xf32>
    %5 = tpu.matmul %4, %3, %cst_3 {dimension_numbers = #tpu.dot_dimension_numbers<[1], [0], [0], [1], [0, 0, 1, 1], [], []>} : vector<8x32xbf16>, vector<32x384xbf16>, vector<8x384xf32> -> vector<8x384xf32>
    %6 = arith.addf %1, %5 : vector<8x384xf32>
    %c0_4 = arith.constant 0 : index
    %c0_5 = arith.constant 0 : index
    %c110 = arith.constant 110 : index
    %7 = vector.load %arg1[%c0_4, %c0_5, %c110] : memref<1x32x640xbf16, #tpu.memory_space<vmem>>, vector<1x32x384xbf16>
    %8 = vector.shape_cast %7 : vector<1x32x384xbf16> to vector<32x384xbf16>
    %9 = vector.extract_strided_slice %0 {offsets = [0, 32], sizes = [8, 32], strides = [1, 1]} : vector<8x288xbf16> to vector<8x32xbf16>
    %cst_6 = arith.constant dense<0.000000e+00> : vector<8x384xf32>
    %10 = tpu.matmul %9, %8, %cst_6 {dimension_numbers = #tpu.dot_dimension_numbers<[1], [0], [0], [1], [0, 0, 1, 1], [], []>} : vector<8x32xbf16>, vector<32x384xbf16>, vector<8x384xf32> -> vector<8x384xf32>
    %11 = arith.addf %6, %10 : vector<8x384xf32>
    %c0_7 = arith.constant 0 : index
    %c0_8 = arith.constant 0 : index
    %c111 = arith.constant 111 : index
    %12 = vector.load %arg1[%c0_7, %c0_8, %c111] : memref<1x32x640xbf16, #tpu.memory_space<vmem>>, vector<1x32x384xbf16>
    %13 = vector.shape_cast %12 : vector<1x32x384xbf16> to vector<32x384xbf16>
    %14 = vector.extract_strided_slice %0 {offsets = [0, 64], sizes = [8, 32], strides = [1, 1]} : vector<8x288xbf16> to vector<8x32xbf16>
    %cst_9 = arith.constant dense<0.000000e+00> : vector<8x384xf32>
    %15 = tpu.matmul %14, %13, %cst_9 {dimension_numbers = #tpu.dot_dimension_numbers<[1], [0], [0], [1], [0, 0, 1, 1], [], []>} : vector<8x32xbf16>, vector<32x384xbf16>, vector<8x384xf32> -> vector<8x384xf32>
    %16 = arith.addf %11, %15 : vector<8x384xf32>
    %c0_10 = arith.constant 0 : index
    %c0_11 = arith.constant 0 : index
    %c127 = arith.constant 127 : index
    %17 = vector.load %arg1[%c0_10, %c0_11, %c127] : memref<1x32x640xbf16, #tpu.memory_space<vmem>>, vector<1x32x384xbf16>
    %18 = vector.shape_cast %17 : vector<1x32x384xbf16> to vector<32x384xbf16>
    %19 = vector.extract_strided_slice %0 {offsets = [0, 96], sizes = [8, 32], strides = [1, 1]} : vector<8x288xbf16> to vector<8x32xbf16>
    %cst_12 = arith.constant dense<0.000000e+00> : vector<8x384xf32>
    %20 = tpu.matmul %19, %18, %cst_12 {dimension_numbers = #tpu.dot_dimension_numbers<[1], [0], [0], [1], [0, 0, 1, 1], [], []>} : vector<8x32xbf16>, vector<32x384xbf16>, vector<8x384xf32> -> vector<8x384xf32>
    %21 = arith.addf %16, %20 : vector<8x384xf32>
    %c0_13 = arith.constant 0 : index
    %c0_14 = arith.constant 0 : index
    %c128 = arith.constant 128 : index
    %22 = vector.load %arg1[%c0_13, %c0_14, %c128] : memref<1x32x640xbf16, #tpu.memory_space<vmem>>, vector<1x32x384xbf16>
    %23 = vector.shape_cast %22 : vector<1x32x384xbf16> to vector<32x384xbf16>
    %24 = vector.extract_strided_slice %0 {offsets = [0, 128], sizes = [8, 32], strides = [1, 1]} : vector<8x288xbf16> to vector<8x32xbf16>
    %cst_15 = arith.constant dense<0.000000e+00> : vector<8x384xf32>
    %25 = tpu.matmul %24, %23, %cst_15 {dimension_numbers = #tpu.dot_dimension_numbers<[1], [0], [0], [1], [0, 0, 1, 1], [], []>} : vector<8x32xbf16>, vector<32x384xbf16>, vector<8x384xf32> -> vector<8x384xf32>
    %26 = arith.addf %21, %25 : vector<8x384xf32>
    %c0_16 = arith.constant 0 : index
    %c0_17 = arith.constant 0 : index
    %c129 = arith.constant 129 : index
    %27 = vector.load %arg1[%c0_16, %c0_17, %c129] : memref<1x32x640xbf16, #tpu.memory_space<vmem>>, vector<1x32x384xbf16>
    %28 = vector.shape_cast %27 : vector<1x32x384xbf16> to vector<32x384xbf16>
    %29 = vector.extract_strided_slice %0 {offsets = [0, 160], sizes = [8, 32], strides = [1, 1]} : vector<8x288xbf16> to vector<8x32xbf16>
    %cst_18 = arith.constant dense<0.000000e+00> : vector<8x384xf32>
    %30 = tpu.matmul %29, %28, %cst_18 {dimension_numbers = #tpu.dot_dimension_numbers<[1], [0], [0], [1], [0, 0, 1, 1], [], []>} : vector<8x32xbf16>, vector<32x384xbf16>, vector<8x384xf32> -> vector<8x384xf32>
    %31 = arith.addf %26, %30 : vector<8x384xf32>
    %c0_19 = arith.constant 0 : index
    %c0_20 = arith.constant 0 : index
    %c145 = arith.constant 145 : index
    %32 = vector.load %arg1[%c0_19, %c0_20, %c145] : memref<1x32x640xbf16, #tpu.memory_space<vmem>>, vector<1x32x384xbf16>
    %33 = vector.shape_cast %32 : vector<1x32x384xbf16> to vector<32x384xbf16>
    %34 = vector.extract_strided_slice %0 {offsets = [0, 192], sizes = [8, 32], strides = [1, 1]} : vector<8x288xbf16> to vector<8x32xbf16>
    %cst_21 = arith.constant dense<0.000000e+00> : vector<8x384xf32>
    %35 = tpu.matmul %34, %33, %cst_21 {dimension_numbers = #tpu.dot_dimension_numbers<[1], [0], [0], [1], [0, 0, 1, 1], [], []>} : vector<8x32xbf16>, vector<32x384xbf16>, vector<8x384xf32> -> vector<8x384xf32>
    %36 = arith.addf %31, %35 : vector<8x384xf32>
    %c0_22 = arith.constant 0 : index
    %c0_23 = arith.constant 0 : index
    %c146 = arith.constant 146 : index
    %37 = vector.load %arg1[%c0_22, %c0_23, %c146] : memref<1x32x640xbf16, #tpu.memory_space<vmem>>, vector<1x32x384xbf16>
    %38 = vector.shape_cast %37 : vector<1x32x384xbf16> to vector<32x384xbf16>
    %39 = vector.extract_strided_slice %0 {offsets = [0, 224], sizes = [8, 32], strides = [1, 1]} : vector<8x288xbf16> to vector<8x32xbf16>
    %cst_24 = arith.constant dense<0.000000e+00> : vector<8x384xf32>
    %40 = tpu.matmul %39, %38, %cst_24 {dimension_numbers = #tpu.dot_dimension_numbers<[1], [0], [0], [1], [0, 0, 1, 1], [], []>} : vector<8x32xbf16>, vector<32x384xbf16>, vector<8x384xf32> -> vector<8x384xf32>
    %41 = arith.addf %36, %40 : vector<8x384xf32>
    %c0_25 = arith.constant 0 : index
    %c0_26 = arith.constant 0 : index
    %c147 = arith.constant 147 : index
    %42 = vector.load %arg1[%c0_25, %c0_26, %c147] : memref<1x32x640xbf16, #tpu.memory_space<vmem>>, vector<1x32x384xbf16>
    %43 = vector.shape_cast %42 : vector<1x32x384xbf16> to vector<32x384xbf16>
    %44 = vector.extract_strided_slice %0 {offsets = [0, 256], sizes = [8, 32], strides = [1, 1]} : vector<8x288xbf16> to vector<8x32xbf16>
    %cst_27 = arith.constant dense<0.000000e+00> : vector<8x384xf32>
    %45 = tpu.matmul %44, %43, %cst_27 {dimension_numbers = #tpu.dot_dimension_numbers<[1], [0], [0], [1], [0, 0, 1, 1], [], []>} : vector<8x32xbf16>, vector<32x384xbf16>, vector<8x384xf32> -> vector<8x384xf32>
    %46 = arith.addf %41, %45 : vector<8x384xf32>
    %c0_28 = arith.constant 0 : index
    %c0_29 = arith.constant 0 : index
    %47 = vector.load %arg3[%c0_28, %c0_29] : memref<8x1xf32, #tpu.memory_space<vmem>>, vector<8x1xf32>
    %48 = vector.broadcast %47 : vector<8x1xf32> to vector<8x384xf32>
    %49 = arith.addf %46, %48 : vector<8x384xf32>
    %cst_30 = arith.constant 0.000000e+00 : f32
    %50 = vector.broadcast %cst_30 : f32 to vector<8x384xf32>
    %51 = arith.maximumf %49, %50 : vector<8x384xf32>
    %c0_31 = arith.constant 0 : index
    %c0_32 = arith.constant 0 : index
    %52 = vector.load %arg8[%c0_31, %c0_32] : memref<1x384xf32, #tpu.memory_space<vmem>>, vector<1x384xf32>
    %53 = vector.broadcast %52 : vector<1x384xf32> to vector<8x384xf32>
    %54 = arith.mulf %51, %53 : vector<8x384xf32>
    %55 = arith.truncf %54 : vector<8x384xf32> to vector<8x384xbf16>
    %cst_33 = arith.constant dense<0.000000e+00> : vector<8x8xf32>
    %56 = tpu.matmul %55, %55, %cst_33 {dimension_numbers = #tpu.dot_dimension_numbers<[1], [1], [0], [0], [0, 0, 1, 0], [], []>} : vector<8x384xbf16>, vector<8x384xbf16>, vector<8x8xf32> -> vector<8x8xf32>
    %cst_34 = arith.constant dense<0x7F800000> : vector<8xf32>
    %57 = vector.multi_reduction <minimumf>, %56, %cst_34 [1] : vector<8x8xf32> to vector<8xf32>
    %58 = vector.shape_cast %57 : vector<8xf32> to vector<8x1xf32>
    %59 = vector.broadcast %58 : vector<8x1xf32> to vector<8x8xf32>
    %60 = arith.subf %59, %56 : vector<8x8xf32>
    %61 = math.exp %60 : vector<8x8xf32>
    %cst_35 = arith.constant dense<0.000000e+00> : vector<8xf32>
    %62 = vector.multi_reduction <add>, %61, %cst_35 [1] : vector<8x8xf32> to vector<8xf32>
    %63 = vector.shape_cast %62 : vector<8xf32> to vector<8x1xf32>
    %64 = tpu.reciprocal %63 {approx = true} : vector<8x1xf32> -> vector<8x1xf32>
    %65 = vector.broadcast %64 : vector<8x1xf32> to vector<8x8xf32>
    %66 = arith.mulf %61, %65 : vector<8x8xf32>
    %67 = arith.truncf %66 : vector<8x8xf32> to vector<8x8xbf16>
    %cst_36 = arith.constant dense<0.000000e+00> : vector<8x384xf32>
    %68 = tpu.matmul %67, %55, %cst_36 {dimension_numbers = #tpu.dot_dimension_numbers<[1], [0], [0], [1], [0, 0, 1, 1], [], []>} : vector<8x8xbf16>, vector<8x384xbf16>, vector<8x384xf32> -> vector<8x384xf32>
    %c0_37 = arith.constant 0 : index
    %c0_38 = arith.constant 0 : index
    %69 = memref.load %arg9[%c0_37, %c0_38] : memref<1x1xf32, #tpu.memory_space<smem>>
    %70 = vector.broadcast %69 : f32 to vector<8x384xf32>
    %71 = arith.mulf %70, %68 : vector<8x384xf32>
    %72 = arith.addf %71, %54 : vector<8x384xf32>
    %cst_39 = arith.constant 0.000000e+00 : bf16
    %73 = vector.broadcast %cst_39 : bf16 to vector<8x128xbf16>
    %c0_40 = arith.constant 0 : index
    %c0_41 = arith.constant 0 : index
    %74 = vector.load %arg11[%c0_40, %c0_41] : memref<8x640xbf16, #tpu.memory_space<vmem>>, vector<8x128xbf16>
    tpu.vector_store %arg11[%c0_40, %c0_41], %73 {strides = array<i32>} : memref<8x640xbf16, #tpu.memory_space<vmem>>, vector<8x128xbf16>,
    %cst_42 = arith.constant 0.000000e+00 : bf16
    %75 = vector.broadcast %cst_42 : bf16 to vector<8x128xbf16>
    %c0_43 = arith.constant 0 : index
    %c512 = arith.constant 512 : index
    %76 = vector.load %arg11[%c0_43, %c512] : memref<8x640xbf16, #tpu.memory_space<vmem>>, vector<8x128xbf16>
    tpu.vector_store %arg11[%c0_43, %c512], %75 {strides = array<i32>} : memref<8x640xbf16, #tpu.memory_space<vmem>>, vector<8x128xbf16>,
    %77 = arith.truncf %72 : vector<8x384xf32> to vector<8x384xbf16>
    %c0_44 = arith.constant 0 : index
    %c128_45 = arith.constant 128 : index
    %78 = vector.load %arg11[%c0_44, %c128_45] : memref<8x640xbf16, #tpu.memory_space<vmem>>, vector<8x384xbf16>
    tpu.vector_store %arg11[%c0_44, %c128_45], %77 {strides = array<i32>} : memref<8x640xbf16, #tpu.memory_space<vmem>>, vector<8x384xbf16>,
    %c0_46 = arith.constant 0 : index
    %c0_47 = arith.constant 0 : index
    %79 = vector.load %arg4[%c0_46, %c0_47] : memref<8x72xbf16, #tpu.memory_space<vmem>>, vector<8x72xbf16>
    %cst_48 = arith.constant 0.000000e+00 : f32
    %80 = vector.broadcast %cst_48 : f32 to vector<8x384xf32>
    %c0_49 = arith.constant 0 : index
    %c109_50 = arith.constant 109 : index
    %81 = vector.load %arg11[%c0_49, %c109_50] : memref<8x640xbf16, #tpu.memory_space<vmem>>, vector<8x384xbf16>
    %82 = vector.extract_strided_slice %79 {offsets = [0, 0], sizes = [8, 8], strides = [1, 1]} : vector<8x72xbf16> to vector<8x8xbf16>
    %cst_51 = arith.constant dense<0.000000e+00> : vector<8x384xf32>
    %83 = tpu.matmul %82, %81, %cst_51 {dimension_numbers = #tpu.dot_dimension_numbers<[1], [0], [0], [1], [0, 0, 1, 1], [], []>} : vector<8x8xbf16>, vector<8x384xbf16>, vector<8x384xf32> -> vector<8x384xf32>
    %84 = arith.addf %80, %83 : vector<8x384xf32>
    %c0_52 = arith.constant 0 : index
    %c110_53 = arith.constant 110 : index
    %85 = vector.load %arg11[%c0_52, %c110_53] : memref<8x640xbf16, #tpu.memory_space<vmem>>, vector<8x384xbf16>
    %86 = vector.extract_strided_slice %79 {offsets = [0, 8], sizes = [8, 8], strides = [1, 1]} : vector<8x72xbf16> to vector<8x8xbf16>
    %cst_54 = arith.constant dense<0.000000e+00> : vector<8x384xf32>
    %87 = tpu.matmul %86, %85, %cst_54 {dimension_numbers = #tpu.dot_dimension_numbers<[1], [0], [0], [1], [0, 0, 1, 1], [], []>} : vector<8x8xbf16>, vector<8x384xbf16>, vector<8x384xf32> -> vector<8x384xf32>
    %88 = arith.addf %84, %87 : vector<8x384xf32>
    %c0_55 = arith.constant 0 : index
    %c111_56 = arith.constant 111 : index
    %89 = vector.load %arg11[%c0_55, %c111_56] : memref<8x640xbf16, #tpu.memory_space<vmem>>, vector<8x384xbf16>
    %90 = vector.extract_strided_slice %79 {offsets = [0, 16], sizes = [8, 8], strides = [1, 1]} : vector<8x72xbf16> to vector<8x8xbf16>
    %cst_57 = arith.constant dense<0.000000e+00> : vector<8x384xf32>
    %91 = tpu.matmul %90, %89, %cst_57 {dimension_numbers = #tpu.dot_dimension_numbers<[1], [0], [0], [1], [0, 0, 1, 1], [], []>} : vector<8x8xbf16>, vector<8x384xbf16>, vector<8x384xf32> -> vector<8x384xf32>
    %92 = arith.addf %88, %91 : vector<8x384xf32>
    %c0_58 = arith.constant 0 : index
    %c127_59 = arith.constant 127 : index
    %93 = vector.load %arg11[%c0_58, %c127_59] : memref<8x640xbf16, #tpu.memory_space<vmem>>, vector<8x384xbf16>
    %94 = vector.extract_strided_slice %79 {offsets = [0, 24], sizes = [8, 8], strides = [1, 1]} : vector<8x72xbf16> to vector<8x8xbf16>
    %cst_60 = arith.constant dense<0.000000e+00> : vector<8x384xf32>
    %95 = tpu.matmul %94, %93, %cst_60 {dimension_numbers = #tpu.dot_dimension_numbers<[1], [0], [0], [1], [0, 0, 1, 1], [], []>} : vector<8x8xbf16>, vector<8x384xbf16>, vector<8x384xf32> -> vector<8x384xf32>
    %96 = arith.addf %92, %95 : vector<8x384xf32>
    %c0_61 = arith.constant 0 : index
    %c128_62 = arith.constant 128 : index
    %97 = vector.load %arg11[%c0_61, %c128_62] : memref<8x640xbf16, #tpu.memory_space<vmem>>, vector<8x384xbf16>
    %98 = vector.extract_strided_slice %79 {offsets = [0, 32], sizes = [8, 8], strides = [1, 1]} : vector<8x72xbf16> to vector<8x8xbf16>
    %cst_63 = arith.constant dense<0.000000e+00> : vector<8x384xf32>
    %99 = tpu.matmul %98, %97, %cst_63 {dimension_numbers = #tpu.dot_dimension_numbers<[1], [0], [0], [1], [0, 0, 1, 1], [], []>} : vector<8x8xbf16>, vector<8x384xbf16>, vector<8x384xf32> -> vector<8x384xf32>
    %100 = arith.addf %96, %99 : vector<8x384xf32>
    %c0_64 = arith.constant 0 : index
    %c129_65 = arith.constant 129 : index
    %101 = vector.load %arg11[%c0_64, %c129_65] : memref<8x640xbf16, #tpu.memory_space<vmem>>, vector<8x384xbf16>
    %102 = vector.extract_strided_slice %79 {offsets = [0, 40], sizes = [8, 8], strides = [1, 1]} : vector<8x72xbf16> to vector<8x8xbf16>
    %cst_66 = arith.constant dense<0.000000e+00> : vector<8x384xf32>
    %103 = tpu.matmul %102, %101, %cst_66 {dimension_numbers = #tpu.dot_dimension_numbers<[1], [0], [0], [1], [0, 0, 1, 1], [], []>} : vector<8x8xbf16>, vector<8x384xbf16>, vector<8x384xf32> -> vector<8x384xf32>
    %104 = arith.addf %100, %103 : vector<8x384xf32>
    %c0_67 = arith.constant 0 : index
    %c145_68 = arith.constant 145 : index
    %105 = vector.load %arg11[%c0_67, %c145_68] : memref<8x640xbf16, #tpu.memory_space<vmem>>, vector<8x384xbf16>
    %106 = vector.extract_strided_slice %79 {offsets = [0, 48], sizes = [8, 8], strides = [1, 1]} : vector<8x72xbf16> to vector<8x8xbf16>
    %cst_69 = arith.constant dense<0.000000e+00> : vector<8x384xf32>
    %107 = tpu.matmul %106, %105, %cst_69 {dimension_numbers = #tpu.dot_dimension_numbers<[1], [0], [0], [1], [0, 0, 1, 1], [], []>} : vector<8x8xbf16>, vector<8x384xbf16>, vector<8x384xf32> -> vector<8x384xf32>
    %108 = arith.addf %104, %107 : vector<8x384xf32>
    %c0_70 = arith.constant 0 : index
    %c146_71 = arith.constant 146 : index
    %109 = vector.load %arg11[%c0_70, %c146_71] : memref<8x640xbf16, #tpu.memory_space<vmem>>, vector<8x384xbf16>
    %110 = vector.extract_strided_slice %79 {offsets = [0, 56], sizes = [8, 8], strides = [1, 1]} : vector<8x72xbf16> to vector<8x8xbf16>
    %cst_72 = arith.constant dense<0.000000e+00> : vector<8x384xf32>
    %111 = tpu.matmul %110, %109, %cst_72 {dimension_numbers = #tpu.dot_dimension_numbers<[1], [0], [0], [1], [0, 0, 1, 1], [], []>} : vector<8x8xbf16>, vector<8x384xbf16>, vector<8x384xf32> -> vector<8x384xf32>
    %112 = arith.addf %108, %111 : vector<8x384xf32>
    %c0_73 = arith.constant 0 : index
    %c147_74 = arith.constant 147 : index
    %113 = vector.load %arg11[%c0_73, %c147_74] : memref<8x640xbf16, #tpu.memory_space<vmem>>, vector<8x384xbf16>
    %114 = vector.extract_strided_slice %79 {offsets = [0, 64], sizes = [8, 8], strides = [1, 1]} : vector<8x72xbf16> to vector<8x8xbf16>
    %cst_75 = arith.constant dense<0.000000e+00> : vector<8x384xf32>
    %115 = tpu.matmul %114, %113, %cst_75 {dimension_numbers = #tpu.dot_dimension_numbers<[1], [0], [0], [1], [0, 0, 1, 1], [], []>} : vector<8x8xbf16>, vector<8x384xbf16>, vector<8x384xf32> -> vector<8x384xf32>
    %116 = arith.addf %112, %115 : vector<8x384xf32>
    %c0_76 = arith.constant 0 : index
    %c0_77 = arith.constant 0 : index
    %117 = vector.load %arg5[%c0_76, %c0_77] : memref<8x1xf32, #tpu.memory_space<vmem>>, vector<8x1xf32>
    %118 = vector.broadcast %117 : vector<8x1xf32> to vector<8x384xf32>
    %119 = arith.addf %116, %118 : vector<8x384xf32>
    %cst_78 = arith.constant 0.000000e+00 : f32
    %120 = vector.broadcast %cst_78 : f32 to vector<8x384xf32>
    %121 = arith.maximumf %119, %120 : vector<8x384xf32>
    %c0_79 = arith.constant 0 : index
    %c0_80 = arith.constant 0 : index
    %122 = vector.load %arg6[%c0_79, %c0_80] : memref<8x8xbf16, #tpu.memory_space<vmem>>, vector<8x8xbf16>
    %123 = arith.truncf %121 : vector<8x384xf32> to vector<8x384xbf16>
    %cst_81 = arith.constant dense<0.000000e+00> : vector<8x384xf32>
    %124 = tpu.matmul %122, %123, %cst_81 {dimension_numbers = #tpu.dot_dimension_numbers<[1], [0], [0], [1], [0, 0, 1, 1], [], []>} : vector<8x8xbf16>, vector<8x384xbf16>, vector<8x384xf32> -> vector<8x384xf32>
    %c0_82 = arith.constant 0 : index
    %c0_83 = arith.constant 0 : index
    %125 = vector.load %arg7[%c0_82, %c0_83] : memref<8x1xf32, #tpu.memory_space<vmem>>, vector<8x1xf32>
    %126 = vector.broadcast %125 : vector<8x1xf32> to vector<8x384xf32>
    %127 = arith.addf %124, %126 : vector<8x384xf32>
    %c0_84 = arith.constant 0 : index
    %c0_85 = arith.constant 0 : index
    %c0_86 = arith.constant 0 : index
    %128 = vector.load %arg10[%c0_84, %c0_85, %c0_86] : memref<1x8x384xf32, #tpu.memory_space<vmem>>, vector<1x8x384xf32>
    %129 = vector.shape_cast %128 : vector<1x8x384xf32> to vector<8x384xf32>
    %130 = vector.shape_cast %127 : vector<8x384xf32> to vector<1x8x384xf32>
    tpu.vector_store %arg10[%c0_84, %c0_85, %c0_86], %130 {strides = array<i32>} : memref<1x8x384xf32, #tpu.memory_space<vmem>>, vector<1x8x384xf32>,
    return
  }
  func.func @transform_0(%arg0: i32) -> (i32, i32, i32) {
    %c0_i32 = arith.constant 0 : i32
    %c0_i32_0 = arith.constant 0 : i32
    %c0_i32_1 = arith.constant 0 : i32
    return %arg0, %c0_i32, %c0_i32_0 : i32, i32, i32
  }
  func.func @transform_1(%arg0: i32) -> (i32, i32) {
    %c0_i32 = arith.constant 0 : i32
    %c0_i32_0 = arith.constant 0 : i32
    %c0_i32_1 = arith.constant 0 : i32
    return %c0_i32, %c0_i32_0 : i32, i32
  }
  func.func @transform_2(%arg0: i32) -> (i32, i32) {
    %c0_i32 = arith.constant 0 : i32
    %c0_i32_0 = arith.constant 0 : i32
    %c0_i32_1 = arith.constant 0 : i32
    return %c0_i32, %c0_i32_0 : i32, i32
  }
  func.func @transform_3(%arg0: i32) -> (i32, i32) {
    %c0_i32 = arith.constant 0 : i32
    %c0_i32_0 = arith.constant 0 : i32
    %c0_i32_1 = arith.constant 0 : i32
    return %c0_i32, %c0_i32_0 : i32, i32
  }
  func.func @transform_4(%arg0: i32) -> (i32, i32) {
    %c0_i32 = arith.constant 0 : i32
    %c0_i32_0 = arith.constant 0 : i32
    %c0_i32_1 = arith.constant 0 : i32
    return %c0_i32, %c0_i32_0 : i32, i32
  }
  func.func @transform_5(%arg0: i32) -> (i32, i32) {
    %c0_i32 = arith.constant 0 : i32
    %c0_i32_0 = arith.constant 0 : i32
    %c0_i32_1 = arith.constant 0 : i32
    return %c0_i32, %c0_i32_0 : i32, i32
  }
  func.func @transform_6(%arg0: i32) -> (i32, i32) {
    %c0_i32 = arith.constant 0 : i32
    %c0_i32_0 = arith.constant 0 : i32
    %c0_i32_1 = arith.constant 0 : i32
    return %c0_i32, %c0_i32_0 : i32, i32
  }
  func.func @transform_7(%arg0: i32) -> (i32, i32) {
    %c0_i32 = arith.constant 0 : i32
    %c0_i32_0 = arith.constant 0 : i32
    %c0_i32_1 = arith.constant 0 : i32
    return %c0_i32, %c0_i32_0 : i32, i32
  }
  func.func @transform_8(%arg0: i32) -> (i32, i32) {
    %c0_i32 = arith.constant 0 : i32
    %c0_i32_0 = arith.constant 0 : i32
    %c0_i32_1 = arith.constant 0 : i32
    return %c0_i32, %c0_i32_0 : i32, i32
  }
  func.func @transform_9(%arg0: i32) -> (i32, i32, i32) {
    %c0_i32 = arith.constant 0 : i32
    %c0_i32_0 = arith.constant 0 : i32
    %c0_i32_1 = arith.constant 0 : i32
    return %arg0, %c0_i32, %c0_i32_0 : i32, i32, i32
  }
}

</mosaic_0001>

<bundles_post_ra>
// kernel: pcam_forward.1
= control target key start
LH: loop header
LB: loop body
LE: loop exit
PB: predicated region body
PF: predicated region fallthrough
CT: control target
= control target key end

     0   :  { %s3354_s11 = smov 0   ;;  %s3866_s0 = inlined_call_operand.vmem [shape: bf16[2,32,640], index: 0, kind: input, shape index: {}]   ;;  %s3867_s1 = inlined_call_operand.vmem [shape: bf16[8,288], index: 1, kind: input, shape index: {}]   ;;  %s3868_s2 = inlined_call_operand.vmem [shape: f32[8,1], index: 2, kind: input, shape index: {}]   ;;  %s3869_s3 = inlined_call_operand.vmem [shape: bf16[8,72], index: 3, kind: input, shape index: {}]   ;;  %s3870_s4 = inlined_call_operand.vmem [shape: f32[8,1], index: 4, kind: input, shape index: {}]   ;;  %s3871_s5 = inlined_call_operand.vmem [shape: bf16[8,8], index: 5, kind: input, shape index: {}]   ;;  %s3872_s6 = inlined_call_operand.vmem [shape: f32[8,1], index: 6, kind: input, shape index: {}]   ;;  %s3873_s7 = inlined_call_operand.vmem [shape: f32[1,384], index: 7, kind: input, shape index: {}]   ;;  %s3874_s8 = inlined_call_operand.<no memory space> [shape: f32[1,1], index: 8, kind: input, shape index: {}]   ;;  %s3875_s9 = inlined_call_operand.vmem [shape: f32[2,8,384], index: 9, kind: output, shape index: {}]  }
   0x1   :  { %14 = sst [smem:[#allocation3]] %s3874_s8 }
   0x2 LB: > { %s2904_s12 = sadd.s32 4294967295, %s3279_s11   ;;  %p2908_p0 = scmp.ge.s32.totalorder %s3279_s11, 1  ;;  %s3279_s11 = sphi %s3354_s11, %s20_s11  }
   0x3   : > { %p288_p1 = scmp.lt.s32.totalorder %s3279_s11, 3 }
   0x5   : > { %p289_p2 = pnand %p2908_p0, %p288_p1 }
   0x6   : > { %p324_p3 = scmp.lt.s32.totalorder (!%p289_p2), %s2904_s12, 1  ;;  %s3282_s16 = smov (!%p289_p2), 18  }
   0x7   : > { %292 = sbr.rel (%p289_p2) target bundleno = 1803 (0x70b), region = 56  ;;  %s3285_s19 = smov (!%p289_p2), 19  }
   0x8   : > { %s3286_s20 = smov (!%p289_p2), 96   ;;  %s3287_s21 = smov (!%p289_p2), 17  }
   0x9   : > { %s3288_s22 = smov (!%p289_p2), 1   ;;  %s3289_s23 = smov (!%p289_p2), 64  }
   0xa   : > { %s3290_s24 = smov (!%p289_p2), 32   ;;  %s3291_s25 = smov (!%p289_p2), 127  }
   0xb   : > { %s3292_s26 = smov (!%p289_p2), 111   ;;  %s3293_s27 = smov (!%p289_p2), 110  }
   0xc   : > { %s3877_s12 = smov (!%p324_p3, %s2904_s12), 1  ;;  %v3281_v0 = vmov 0.0   ;;  %v3283_v7 = vmov 0   ;;  %vm3284_vm0 = vmmov 0   ;;  %v3397_v10 = vld [vmem:[%s3867_s1] sm:$0xff]  ;;  %vm398_vm1 = vcmask 146432  }
   0xd   : > { %s3199_s8 = smul.u32 80, %s3877_s12  ;;  %3055 = vmatprep.subr.bf16.mxu1 %v3281_v0  ;;  %447 = vmatprep.mubr.bf16.mxu0 %v3283_v7  ;;  %1714 = vst [vmem:[#allocation2] sm:$0xf] %v3283_v7  ;;  %1715 = vst [vmem:[#allocation2 + $0x10] sm:$0xf] %v3283_v7  ;;  %v2911_v11 = vcombine.low %v3397_v10, %v3397_v10  ;;  %v3466_v20 = vcombine.high %v3397_v10, %v3397_v10  ;;  %s3294_s28 = smov 109  }
   0xe   : > { %3059 = vmatprep.mubr.msk.bf16.mxu1 %vm3284_vm0, %v3281_v0  ;;  %3229 = vset.pattern.permute.xlu0 %v3283_v7  ;;  %vm512_vm2 = vcmask 154624   ;;  %vm411_vm3 = vcmask 261120   ;;  %v1484_v41 = vld [vmem:[%s3868_s2] sm:$0xff]  ;;  %vm627_vm4 = vcmask 138240   ;;  %vm745_vm5 = vcmask 7168   ;;  %s3295_s18 = smov 112  }
   0xf   : > { %s3369_s15 = scalar_lea.vmem %s3866_s0, %s3199_s8  ;;  %3230 = vset.pattern.permute.xlu1 %v3283_v7  ;;  %vm1032_vm6 = vcmask 1039360   ;;  %vm1150_vm7 = vcmask 908288   ;;  %vm1268_vm8 = vcmask 900096   ;;  %vm1384_vm9 = vcmask 891904   ;;  %s1706_s29 = sld [smem:[#allocation3]] }
  0x10   : > { %v3231_v1 = vld [vmem:[%s3369_s15 + $0x2c] ss:$20 sps:$4 sm:$0xff]   ;;  %v3233_v2 = vld [vmem:[%s3369_s15 + $0x28] ss:$20 sps:$4 sm:$0xff]   ;;  %v3234_v3 = vld [vmem:[%s3369_s15 + $0x30] ss:$20 sps:$4 sm:$0xff]  }
  0x11   : > { %392 = vrot.lane.b32.xlu0 %v3231_v1, %s3282_s16  ;;  %390 = vrot.lane.b32.xlu1 %v3233_v2, %s3282_s16  ;;  %v3236_v4 = vld [vmem:[%s3369_s15 + $0x4] ss:$20 sps:$4 sm:$0xff]   ;;  %v3238_v5 = vld [vmem:[%s3369_s15 + $0x8] ss:$20 sps:$4 sm:$0xff]   ;;  %vm1615_vm10 = vcmask 1043456   ;;  %vm1599_vm11 = vcmask 64512  }
  0x12   : > { %v3240_v6 = vld [vmem:[%s3369_s15 + $0x34] ss:$20 sps:$4 sm:$0xff]   ;;  %v3241_v8 = vld [vmem:[%s3369_s15 + $0xc] ss:$20 sps:$4 sm:$0xff]   ;;  %v3428_v12 = vld [vmem:[%s3369_s15 + $0x30] ss:$20 sps:$4 sm:$0xff]  }
  0x13   : > { %v3242_v9 = vld [vmem:[%s3369_s15] ss:$20 sps:$4 sm:$0xff]   ;;  %v3439_v15 = vld [vmem:[%s3369_s15 + $0x8] ss:$20 sps:$4 sm:$0xff]   ;;  %v3447_v17 = vld [vmem:[%s3369_s15 + $0x38] ss:$20 sps:$4 sm:$0xff]  }
  0x14   : > { %v3247_v13 = vld [vmem:[%s3369_s15 + $0x34] ss:$20 sps:$4 sm:$0xff]   ;;  %v3435_v14 = vld [vmem:[%s3369_s15 + $0x2c] ss:$20 sps:$4 sm:$0xff]   ;;  %v3451_v18 = vld [vmem:[%s3369_s15 + $0x4] ss:$20 sps:$4 sm:$0xff]  }
  0x15   : > { %394 = vrot.lane.b32.xlu0 %v3234_v3, %s3282_s16  ;;  %384 = vrot.lane.b32.xlu1 %v3236_v4, %s3282_s16  ;;  %v3249_v16 = vld [vmem:[%s3369_s15 + $0xc] ss:$20 sps:$4 sm:$0xff]   ;;  %v3456_v19 = vld [vmem:[%s3369_s15 + $0x10] ss:$20 sps:$4 sm:$0xff]   ;;  %s3297_s30 = smov 104  }
  0x19   : > { %386 = vrot.lane.b32.xlu0 %v3238_v5, %s3282_s16  ;;  %396 = vrot.lane.b32.xlu1 %v3240_v6, %s3282_s16 }
  0x1d   : > { %382 = vrot.lane.b32.xlu0 %v3242_v9, %s3282_s16  ;;  %388 = vrot.lane.b32.xlu1 %v3241_v8, %s3282_s16 }
  0x21   : > { %506 = vrot.lane.b32.xlu0 %v3231_v1, %s3285_s19  ;;  %508 = vrot.lane.b32.xlu1 %v3234_v3, %s3285_s19 }
  0x25   : > { %348 = vrot.lane.b32.xlu0 %v2911_v11, %s3286_s20  ;;  %504 = vrot.lane.b32.xlu1 %v3233_v2, %s3285_s19 }
  0x29   : > { %498 = vrot.lane.b32.xlu0 %v3236_v4, %s3285_s19  ;;  %500 = vrot.lane.b32.xlu1 %v3238_v5, %s3285_s19 }
  0x2d   : > { %510 = vrot.lane.b32.xlu0 %v3240_v6, %s3285_s19  ;;  %496 = vrot.lane.b32.xlu1 %v3242_v9, %s3285_s19 }
  0x31   : > { %502 = vrot.lane.b32.xlu0 %v3241_v8, %s3285_s19  ;;  %621 = vrot.lane.b32.xlu1 %v3231_v1, %s3287_s21 }
  0x35   : > { %623 = vrot.lane.b32.xlu0 %v3234_v3, %s3287_s21  ;;  %619 = vrot.lane.b32.xlu1 %v3233_v2, %s3287_s21 }
  0x39   : > { %613 = vrot.lane.b32.xlu0 %v3236_v4, %s3287_s21  ;;  %615 = vrot.lane.b32.xlu1 %v3238_v5, %s3287_s21 }
  0x3d   : > { %625 = vrot.lane.b32.xlu0 %v3240_v6, %s3287_s21  ;;  %611 = vrot.lane.b32.xlu1 %v3242_v9, %s3287_s21 }
  0x41   : > { %617 = vrot.lane.b32.xlu0 %v3241_v8, %s3287_s21  ;;  %739 = vrot.lane.b32.xlu1 %v3231_v1, %s3288_s22 }
  0x45   : > { %741 = vrot.lane.b32.xlu0 %v3234_v3, %s3288_s22  ;;  %609 = vrot.lane.b32.xlu1 %v2911_v11, %s3289_s23 }
  0x49   : > { %737 = vrot.lane.b32.xlu0 %v3233_v2, %s3288_s22  ;;  %731 = vrot.lane.b32.xlu1 %v3236_v4, %s3288_s22 }
  0x4d   : > { %733 = vrot.lane.b32.xlu0 %v3238_v5, %s3288_s22  ;;  %743 = vrot.lane.b32.xlu1 %v3240_v6, %s3288_s22 }
  0x51   : > { %729 = vrot.lane.b32.xlu0 %v3242_v9, %s3288_s22  ;;  %735 = vrot.lane.b32.xlu1 %v3241_v8, %s3288_s22 }
  0x55   : > { %727 = vrot.lane.b32.xlu0 %v2911_v11, %s3290_s24  ;;  %1026 = vrot.lane.b32.xlu1 %v3428_v12, %s3291_s25 }
  0x59   : > { %1028 = vrot.lane.b32.xlu0 %v3247_v13, %s3291_s25  ;;  %1024 = vrot.lane.b32.xlu1 %v3435_v14, %s3291_s25 }
  0x5d   : > { %1018 = vrot.lane.b32.xlu0 %v3439_v15, %s3291_s25  ;;  %1020 = vrot.lane.b32.xlu1 %v3249_v16, %s3291_s25 }
  0x61   : > { %1030 = vrot.lane.b32.xlu0 %v3447_v17, %s3291_s25  ;;  %1016 = vrot.lane.b32.xlu1 %v3451_v18, %s3291_s25 }
  0x65   : > { %1022 = vrot.lane.b32.xlu0 %v3456_v19, %s3291_s25  ;;  %1144 = vrot.lane.b32.xlu1 %v3428_v12, %s3292_s26 }
  0x69   : > { %1146 = vrot.lane.b32.xlu0 %v3247_v13, %s3292_s26  ;;  %982 = vrot.lane.b32.xlu1 %v3466_v20, %s3286_s20 }
  0x6d   : > { %1142 = vrot.lane.b32.xlu0 %v3435_v14, %s3292_s26  ;;  %1136 = vrot.lane.b32.xlu1 %v3439_v15, %s3292_s26 }
  0x71   : > { %1138 = vrot.lane.b32.xlu0 %v3249_v16, %s3292_s26  ;;  %1148 = vrot.lane.b32.xlu1 %v3447_v17, %s3292_s26 }
  0x75   : > { %1134 = vrot.lane.b32.xlu0 %v3451_v18, %s3292_s26  ;;  %1140 = vrot.lane.b32.xlu1 %v3456_v19, %s3292_s26 }
  0x79   : > { %1262 = vrot.lane.b32.xlu0 %v3428_v12, %s3293_s27  ;;  %1264 = vrot.lane.b32.xlu1 %v3247_v13, %s3293_s27 }
  0x7d   : > { %1132 = vrot.lane.b32.xlu0 %v3466_v20, %s3289_s23  ;;  %1260 = vrot.lane.b32.xlu1 %v3435_v14, %s3293_s27 }
  0x81   : > { %1254 = vrot.lane.b32.xlu0 %v3439_v15, %s3293_s27  ;;  %1256 = vrot.lane.b32.xlu1 %v3249_v16, %s3293_s27 }
  0x83   : > { %v393_v21 = vpop.permute.xlu0 %392  ;;  %v391_v22 = vpop.permute.xlu1 %390 }
  0x84   : > { %v402_v26 = vsel %vm398_vm1, %v391_v22, %v393_v21 }
  0x85   : > { %1266 = vrot.lane.b32.xlu0 %v3447_v17, %s3293_s27  ;;  %1252 = vrot.lane.b32.xlu1 %v3451_v18, %s3293_s27 }
  0x87   : > { %v395_v23 = vpop.permute.xlu0 %394  ;;  %v385_v24 = vpop.permute.xlu1 %384 }
  0x88   : > { %v403_v25 = vsel %vm398_vm1, %v393_v21, %v395_v23 }
  0x89   : > { %427 = vmatprep.subr.bf16.mxu0 %v403_v25  ;;  %1258 = vrot.lane.b32.xlu0 %v3456_v19, %s3293_s27 }
  0x8a   : > { %1378 = vrot.lane.b32.xlu1 %v3428_v12, %s3294_s28  ;;  %428 = vmatpush1.bf16.msra.mxu0 %v402_v26  ;;  %v3258_v26 = vld [vmem:[%s3369_s15 + $0xc] ss:$20 sps:$4 sm:$0xff]  }
  0x8b   : > { %v387_v27 = vpop.permute.xlu0 %386  ;;  %v397_v28 = vpop.permute.xlu1 %396 }
  0x8c   : > { %v400_v29 = vsel %vm398_vm1, %v385_v24, %v387_v27  ;;  %v404_v30 = vsel %vm398_vm1, %v395_v23, %v397_v28  ;;  %v3257_v23 = vld [vmem:[%s3369_s15 + $0x34] ss:$20 sps:$4 sm:$0xff]  }
  0x8d   : > { %429 = vmatprep.subr.bf16.mxu0 %v400_v29  ;;  %1380 = vrot.lane.b32.xlu0 %v3247_v13, %s3294_s28 }
  0x8e   : > { %3056 = vmatpush3.bf16.msra.mxu1 %v404_v30  ;;  %1250 = vrot.lane.b32.xlu1 %v3466_v20, %s3290_s24  ;;  %s3296_s24 = smov 120  }
  0x8f   : > { %v383_v31 = vpop.permute.xlu0 %382  ;;  %3057 = vmatprep.subr.bf16.mxu1 %v3281_v0  ;;  %v389_v32 = vpop.permute.xlu1 %388 }
  0x90   : > { %v399_v33 = vsel %vm398_vm1, %v383_v31, %v385_v24  ;;  %v401_v34 = vsel %vm398_vm1, %v387_v27, %v389_v32 }
  0x91   : > { %1376 = vrot.lane.b32.xlu0 %v3435_v14, %s3294_s28  ;;  %430 = vmatpush1.bf16.msra.mxu0 %v399_v33 }
  0x92   : > { %3058 = vmatpush3.bf16.msra.mxu1 %v401_v34  ;;  %1370 = vrot.lane.b32.xlu1 %v3439_v15, %s3294_s28 }
  0x93   : > { %v507_v35 = vpop.permute.xlu0 %506  ;;  %3063 = vmatprep.subr.bf16.mxu1 %v3281_v0  ;;  %v509_v36 = vpop.permute.xlu1 %508 }
  0x94   : > { %v517_v37 = vsel %vm512_vm2, %v507_v35, %v509_v36 }
  0x95   : > { %1372 = vrot.lane.b32.xlu0 %v3249_v16, %s3294_s28  ;;  %540 = vmatprep.subr.bf16.mxu0 %v517_v37 }
  0x96   : > { %1382 = vrot.lane.b32.xlu1 %v3447_v17, %s3294_s28 }
  0x97   : > { %v349_v38 = vpop.permute.xlu0 %348  ;;  %v505_v39 = vpop.permute.xlu1 %504 }
  0x98   : > { %2920 = vmatmul.mubr.msk.bf16.vlgmr.msra.gmra.mxu0 %vm411_vm3, %v349_v38  ;;  %3060 = vmatmul.mubr.msk.bf16.vlgmr.msra.gmra.mxu1 %vm411_vm3, %v349_v38  ;;  %v516_v40 = vsel %vm512_vm2, %v505_v39, %v507_v35 }
  0x99   : > { %1368 = vrot.lane.b32.xlu0 %v3451_v18, %s3294_s28  ;;  %560 = vmatprep.mubr.bf16.mxu0 %v3283_v7 }
  0x9a   : > { %1374 = vrot.lane.b32.xlu1 %v3456_v19, %s3294_s28  ;;  %541 = vmatpush1.bf16.msra.mxu0 %v516_v40 }
  0x9b   : > { %v499_v42 = vpop.permute.xlu0 %498  ;;  %3067 = vmatprep.mubr.msk.bf16.mxu1 %vm3284_vm0, %v3281_v0  ;;  %v501_v43 = vpop.permute.xlu1 %500 }
  0x9c   : > { %v514_v44 = vsel %vm512_vm2, %v499_v42, %v501_v43 }
  0x9d   : > { %1487 = vperm.xlu0 %3229, %v1484_v41   ;;  %542 = vmatprep.subr.bf16.mxu0 %v514_v44 }
  0x9f   : > { %v511_v45 = vpop.permute.xlu0 %510  ;;  %v497_v46 = vpop.permute.xlu1 %496 }
  0xa0   : > { %v518_v47 = vsel %vm512_vm2, %v509_v36, %v511_v45  ;;  %v513_v48 = vsel %vm512_vm2, %v497_v46, %v499_v42 }
  0xa1   : > { %3064 = vmatpush3.bf16.msra.mxu1 %v518_v47  ;;  %543 = vmatpush1.bf16.msra.mxu0 %v513_v48 }
  0xa2   : > { %3065 = vmatprep.subr.bf16.mxu1 %v3281_v0 }
  0xa3   : > { %v503_v49 = vpop.permute.xlu0 %502  ;;  %v622_v50 = vpop.permute.xlu1 %621 }
  0xa4   : > { %v515_v51 = vsel %vm512_vm2, %v501_v43, %v503_v49  ;;  %2922 = vmatmul.mubr.msk.bf16.vlgmr.msra.gmra.mxu0 %vm411_vm3, %v3397_v10 }
  0xa5   : > { %3066 = vmatpush3.bf16.msra.mxu1 %v515_v51  ;;  %675 = vmatprep.mubr.bf16.mxu0 %v3283_v7 }
  0xa6   : > { %3071 = vmatprep.subr.bf16.mxu1 %v3281_v0 }
  0xa7   : > { %v624_v52 = vpop.permute.xlu0 %623  ;;  %v620_v53 = vpop.permute.xlu1 %619 }
  0xa8   : > { %3068 = vmatmul.mubr.msk.bf16.vlgmr.msra.gmra.mxu1 %vm411_vm3, %v3397_v10  ;;  %v632_v54 = vsel %vm627_vm4, %v622_v50, %v624_v52  ;;  %v631_v55 = vsel %vm627_vm4, %v620_v53, %v622_v50 }
  0xa9   : > { %655 = vmatprep.subr.bf16.mxu0 %v632_v54  ;;  %3075 = vmatprep.mubr.msk.bf16.mxu1 %vm3284_vm0, %v3281_v0 }
  0xaa   : > { %656 = vmatpush1.bf16.msra.mxu0 %v631_v55 }
  0xab   : > { %v614_v56 = vpop.permute.xlu0 %613  ;;  %v616_v57 = vpop.permute.xlu1 %615 }
  0xac   : > { %v629_v58 = vsel %vm627_vm4, %v614_v56, %v616_v57 }
  0xad   : > { %657 = vmatprep.subr.bf16.mxu0 %v629_v58 }
  0xaf   : > { %v626_v59 = vpop.permute.xlu0 %625  ;;  %v612_v60 = vpop.permute.xlu1 %611 }
  0xb0   : > { %v633_v61 = vsel %vm627_vm4, %v624_v52, %v626_v59  ;;  %v628_v62 = vsel %vm627_vm4, %v612_v60, %v614_v56 }
  0xb1   : > { %3072 = vmatpush3.bf16.msra.mxu1 %v633_v61  ;;  %658 = vmatpush1.bf16.msra.mxu0 %v628_v62 }
  0xb2   : > { %3073 = vmatprep.subr.bf16.mxu1 %v3281_v0 }
  0xb3   : > { %v618_v63 = vpop.permute.xlu0 %617  ;;  %v740_v1 = vpop.permute.xlu1 %739 }
  0xb4   : > { %v630_v2 = vsel %vm627_vm4, %v616_v57, %v618_v63 }
  0xb5   : > { %3074 = vmatpush3.bf16.msra.mxu1 %v630_v2 }
  0xb6   : > { %3079 = vmatprep.subr.bf16.mxu1 %v3281_v0 }
  0xb7   : > { %v742_v3 = vpop.permute.xlu0 %741  ;;  %v610_v4 = vpop.permute.xlu1 %609 }
  0xb8   : > { %v750_v5 = vsel %vm745_vm5, %v740_v1, %v742_v3  ;;  %2924 = vmatmul.mubr.msk.bf16.vlgmr.msra.gmra.mxu0 %vm411_vm3, %v610_v4  ;;  %3076 = vmatmul.mubr.msk.bf16.vlgmr.msra.gmra.mxu1 %vm411_vm3, %v610_v4 }
  0xb9   : > { %773 = vmatprep.subr.bf16.mxu0 %v750_v5  ;;  %793 = vmatprep.mubr.bf16.mxu0 %v3283_v7 }
  0xba   : > { %3083 = vmatprep.mubr.msk.bf16.mxu1 %vm3284_vm0, %v3281_v0 }
  0xbb   : > { %v738_v6 = vpop.permute.xlu0 %737  ;;  %v732_v8 = vpop.permute.xlu1 %731 }
  0xbc   : > { %v749_v9 = vsel %vm745_vm5, %v738_v6, %v740_v1 }
  0xbd   : > { %774 = vmatpush1.bf16.msra.mxu0 %v749_v9 }
  0xbf   : > { %v734_v10 = vpop.permute.xlu0 %733  ;;  %v744_v11 = vpop.permute.xlu1 %743 }
  0xc0   : > { %v747_v13 = vsel %vm745_vm5, %v732_v8, %v734_v10  ;;  %v751_v16 = vsel %vm745_vm5, %v742_v3, %v744_v11 }
  0xc1   : > { %775 = vmatprep.subr.bf16.mxu0 %v747_v13  ;;  %3080 = vmatpush3.bf16.msra.mxu1 %v751_v16 }
  0xc2   : > { %3081 = vmatprep.subr.bf16.mxu1 %v3281_v0 }
  0xc3   : > { %v730_v17 = vpop.permute.xlu0 %729  ;;  %v736_v19 = vpop.permute.xlu1 %735 }
  0xc4   : > { %v746_v21 = vsel %vm745_vm5, %v730_v17, %v732_v8  ;;  %v748_v22 = vsel %vm745_vm5, %v734_v10, %v736_v19 }
  0xc5   : > { %776 = vmatpush1.bf16.msra.mxu0 %v746_v21  ;;  %3082 = vmatpush3.bf16.msra.mxu1 %v748_v22 }
  0xc6   : > { %902 = vmatprep.subr.bf16.mxu0 %v3428_v12  ;;  %3087 = vmatprep.subr.bf16.mxu1 %v3281_v0 }
  0xc7   : > { %v728_v24 = vpop.permute.xlu0 %727  ;;  %v1027_v25 = vpop.permute.xlu1 %1026 }
  0xc8   : > { %2926 = vmatmul.mubr.msk.bf16.vlgmr.msra.gmra.mxu0 %vm411_vm3, %v728_v24  ;;  %3084 = vmatmul.mubr.msk.bf16.vlgmr.msra.gmra.mxu1 %vm411_vm3, %v728_v24 }
  0xc9   : > { %903 = vmatpush1.bf16.msra.mxu0 %v3435_v14  ;;  %3088 = vmatpush3.bf16.msra.mxu1 %v3257_v23  ;;  %v336_v23 = vld [vmem:[%s3867_s1 + $0x8] sm:$0xf] }
  0xca   : > { %904 = vmatprep.subr.bf16.mxu0 %v3439_v15  ;;  %3089 = vmatprep.subr.bf16.mxu1 %v3281_v0 }
  0xcb   : > { %v1029_v27 = vpop.permute.xlu0 %1028  ;;  %922 = vmatprep.mubr.bf16.mxu0 %v3283_v7  ;;  %v1025_v12 = vpop.permute.xlu1 %1024  ;;  %3091 = vmatprep.mubr.msk.bf16.mxu1 %vm3284_vm0, %v3281_v0 }
  0xcc   : > { %v1037_v28 = vsel %vm1032_vm6, %v1027_v25, %v1029_v27  ;;  %v1036_v15 = vsel %vm1032_vm6, %v1025_v12, %v1027_v25 }
  0xcd   : > { %905 = vmatpush1.bf16.msra.mxu0 %v3451_v18  ;;  %3090 = vmatpush3.bf16.msra.mxu1 %v3258_v26 }
  0xce   : > { %1060 = vmatprep.subr.bf16.mxu0 %v1037_v28  ;;  %3095 = vmatprep.subr.bf16.mxu1 %v3281_v0 }
  0xcf   : > { %v1019_v14 = vpop.permute.xlu0 %1018  ;;  %v1021_v29 = vpop.permute.xlu1 %1020 }
  0xd0   : > { %2935 = vmatmul.mubr.msk.bf16.vlgmr.msra.gmra.mxu0 %vm411_vm3, %v3466_v20  ;;  %3092 = vmatmul.mubr.msk.bf16.vlgmr.msra.gmra.mxu1 %vm411_vm3, %v3466_v20  ;;  %v1034_v30 = vsel %vm1032_vm6, %v1019_v14, %v1021_v29 }
  0xd1   : > { %1061 = vmatpush1.bf16.msra.mxu0 %v1036_v15  ;;  %1080 = vmatprep.mubr.bf16.mxu0 %v3283_v7 }
  0xd2   : > { %1062 = vmatprep.subr.bf16.mxu0 %v1034_v30  ;;  %3099 = vmatprep.mubr.msk.bf16.mxu1 %vm3284_vm0, %v3281_v0 }
  0xd3   : > { %v1031_v18 = vpop.permute.xlu0 %1030  ;;  %v1017_v31 = vpop.permute.xlu1 %1016 }
  0xd4   : > { %v1038_v32 = vsel %vm1032_vm6, %v1029_v27, %v1031_v18  ;;  %v1033_v33 = vsel %vm1032_vm6, %v1017_v31, %v1019_v14 }
  0xd5   : > { %3096 = vmatpush3.bf16.msra.mxu1 %v1038_v32  ;;  %1063 = vmatpush1.bf16.msra.mxu0 %v1033_v33 }
  0xd6   : > { %3097 = vmatprep.subr.bf16.mxu1 %v3281_v0 }
  0xd7   : > { %v1023_v20 = vpop.permute.xlu0 %1022  ;;  %v1145_v34 = vpop.permute.xlu1 %1144 }
  0xd8   : > { %v1035_v35 = vsel %vm1032_vm6, %v1021_v29, %v1023_v20 }
  0xd9   : > { %3098 = vmatpush3.bf16.msra.mxu1 %v1035_v35 }
  0xda   : > { %3103 = vmatprep.subr.bf16.mxu1 %v3281_v0 }
  0xdb   : > { %v1147_v36 = vpop.permute.xlu0 %1146  ;;  %v983_v37 = vpop.permute.xlu1 %982 }
  0xdc   : > { %v1155_v38 = vsel %vm1150_vm7, %v1145_v34, %v1147_v36  ;;  %2945 = vmatmul.mubr.msk.bf16.vlgmr.msra.gmra.mxu0 %vm411_vm3, %v983_v37  ;;  %3100 = vmatmul.mubr.msk.bf16.vlgmr.msra.gmra.mxu1 %vm411_vm3, %v983_v37 }
  0xdd   : > { %1178 = vmatprep.subr.bf16.mxu0 %v1155_v38  ;;  %1198 = vmatprep.mubr.bf16.mxu0 %v3283_v7 }
  0xde   : > { %3107 = vmatprep.mubr.msk.bf16.mxu1 %vm3284_vm0, %v3281_v0 }
  0xdf   : > { %v1143_v39 = vpop.permute.xlu0 %1142  ;;  %v1137_v40 = vpop.permute.xlu1 %1136 }
  0xe0   : > { %v1154_v41 = vsel %vm1150_vm7, %v1143_v39, %v1145_v34 }
  0xe1   : > { %1179 = vmatpush1.bf16.msra.mxu0 %v1154_v41 }
  0xe3   : > { %v1139_v42 = vpop.permute.xlu0 %1138  ;;  %v1149_v43 = vpop.permute.xlu1 %1148 }
  0xe4   : > { %v1152_v44 = vsel %vm1150_vm7, %v1137_v40, %v1139_v42  ;;  %v1156_v45 = vsel %vm1150_vm7, %v1147_v36, %v1149_v43 }
  0xe5   : > { %1180 = vmatprep.subr.bf16.mxu0 %v1152_v44  ;;  %3104 = vmatpush3.bf16.msra.mxu1 %v1156_v45 }
  0xe6   : > { %3105 = vmatprep.subr.bf16.mxu1 %v3281_v0 }
  0xe7   : > { %v1135_v46 = vpop.permute.xlu0 %1134  ;;  %v1141_v47 = vpop.permute.xlu1 %1140 }
  0xe8   : > { %v1151_v48 = vsel %vm1150_vm7, %v1135_v46, %v1137_v40  ;;  %v1153_v49 = vsel %vm1150_vm7, %v1139_v42, %v1141_v47 }
  0xe9   : > { %1181 = vmatpush1.bf16.msra.mxu0 %v1151_v48  ;;  %3106 = vmatpush3.bf16.msra.mxu1 %v1153_v49 }
  0xea   : > { %3111 = vmatprep.subr.bf16.mxu1 %v3281_v0 }
  0xeb   : > { %v1263_v50 = vpop.permute.xlu0 %1262  ;;  %v1265_v51 = vpop.permute.xlu1 %1264 }
  0xec   : > { %v1273_v52 = vsel %vm1268_vm8, %v1263_v50, %v1265_v51 }
  0xed   : > { %1296 = vmatprep.subr.bf16.mxu0 %v1273_v52 }
  0xef   : > { %v1133_v53 = vpop.permute.xlu0 %1132  ;;  %v1261_v54 = vpop.permute.xlu1 %1260 }
  0xf0   : > { %2947 = vmatmul.mubr.msk.bf16.vlgmr.msra.gmra.mxu0 %vm411_vm3, %v1133_v53  ;;  %3108 = vmatmul.mubr.msk.bf16.vlgmr.msra.gmra.mxu1 %vm411_vm3, %v1133_v53  ;;  %v1272_v55 = vsel %vm1268_vm8, %v1261_v54, %v1263_v50 }
  0xf1   : > { %1316 = vmatprep.mubr.bf16.mxu0 %v3283_v7  ;;  %3115 = vmatprep.mubr.msk.bf16.mxu1 %vm3284_vm0, %v3281_v0 }
  0xf2   : > { %1297 = vmatpush1.bf16.msra.mxu0 %v1272_v55 }
  0xf3   : > { %v1255_v56 = vpop.permute.xlu0 %1254  ;;  %v1257_v57 = vpop.permute.xlu1 %1256 }
  0xf4   : > { %v1270_v58 = vsel %vm1268_vm8, %v1255_v56, %v1257_v57 }
  0xf5   : > { %1298 = vmatprep.subr.bf16.mxu0 %v1270_v58 }
  0xf7   : > { %v1267_v59 = vpop.permute.xlu0 %1266  ;;  %v1253_v60 = vpop.permute.xlu1 %1252 }
  0xf8   : > { %v1274_v61 = vsel %vm1268_vm8, %v1265_v51, %v1267_v59  ;;  %v1269_v62 = vsel %vm1268_vm8, %v1253_v60, %v1255_v56 }
  0xf9   : > { %3112 = vmatpush3.bf16.msra.mxu1 %v1274_v61  ;;  %1299 = vmatpush1.bf16.msra.mxu0 %v1269_v62 }
  0xfa   : > { %3113 = vmatprep.subr.bf16.mxu1 %v3281_v0 }
  0xfb   : > { %v1259_v63 = vpop.permute.xlu0 %1258 }
  0xfc   : > { %v1379_v1 = vpop.permute.xlu1 %1378  ;;  %v1271_v2 = vsel %vm1268_vm8, %v1257_v57, %v1259_v63 }
  0xfd   : > { %3114 = vmatpush3.bf16.msra.mxu1 %v1271_v2 }
  0xfe   : > { %3119 = vmatprep.subr.bf16.mxu1 %v3281_v0 }
  0xff   : > { %v1381_v3 = vpop.permute.xlu0 %1380 }
 0x100   : > { %v1251_v4 = vpop.permute.xlu1 %1250  ;;  %v1389_v5 = vsel %vm1384_vm9, %v1379_v1, %v1381_v3 }
 0x101   : > { %2949 = vmatmul.mubr.msk.bf16.vlgmr.msra.gmra.mxu0 %vm411_vm3, %v1251_v4  ;;  %3116 = vmatmul.mubr.msk.bf16.vlgmr.msra.gmra.mxu1 %vm411_vm3, %v1251_v4 }
 0x102   : > { %1412 = vmatprep.subr.bf16.mxu0 %v1389_v5  ;;  %1432 = vmatprep.mubr.bf16.mxu0 %v3283_v7 }
 0x103   : > { %v1377_v6 = vpop.permute.xlu0 %1376  ;;  %3123 = vmatprep.mubr.msk.bf16.mxu1 %vm3284_vm0, %v3281_v0 }
 0x104   : > { %v1371_v8 = vpop.permute.xlu1 %1370  ;;  %v1388_v9 = vsel %vm1384_vm9, %v1377_v6, %v1379_v1 }
 0x105   : > { %1413 = vmatpush1.bf16.msra.mxu0 %v1388_v9 }
 0x107   : > { %v1373_v10 = vpop.permute.xlu0 %1372 }
 0x108   : > { %v1383_v11 = vpop.permute.xlu1 %1382  ;;  %v1386_v13 = vsel %vm1384_vm9, %v1371_v8, %v1373_v10 }
 0x109   : > { %v1390_v16 = vsel %vm1384_vm9, %v1381_v3, %v1383_v11  ;;  %1414 = vmatprep.subr.bf16.mxu0 %v1386_v13 }
 0x10a   : > { %3120 = vmatpush3.bf16.msra.mxu1 %v1390_v16 }
 0x10b   : > { %v1369_v17 = vpop.permute.xlu0 %1368  ;;  %3121 = vmatprep.subr.bf16.mxu1 %v3281_v0 }
 0x10c   : > { %v1375_v19 = vpop.permute.xlu1 %1374  ;;  %v1385_v21 = vsel %vm1384_vm9, %v1369_v17, %v1371_v8 }
 0x10d   : > { %v1387_v22 = vsel %vm1384_vm9, %v1373_v10, %v1375_v19  ;;  %1415 = vmatpush1.bf16.msra.mxu0 %v1385_v21 }
 0x10e   : > { %3122 = vmatpush3.bf16.msra.mxu1 %v1387_v22 }
 0x10f   : > { %3127 = vmatprep.subr.bf16.mxu1 %v3281_v0 }
 0x110   : > { %2951 = vmatmul.mubr.msk.bf16.vlgmr.msra.gmra.mxu0 %vm411_vm3, %v336_v23 }
 0x111   : > { %3124 = vmatmul.mubr.msk.bf16.vlgmr.msra.gmra.mxu1 %vm411_vm3, %v336_v23 }
 0x112   : > { %3129 = vmatprep.mubr.msk.bf16.mxu1 %vm3284_vm0, %v3281_v0 }
 0x158   : > { %v449_v24 = vpop.f32.mrf.mxu0  ;;  %v490_v25 = vpop.f32.mrf.mxu1 }
 0x15a   : > { %v451_v26 = vpop.f32.mrf.mxu0  ;;  %v3061_v27 = vpop.f32.mrf.mxu1 }
 0x15c   : > { %v453_v12 = vpop.f32.mrf.mxu0  ;;  %v493_v28 = vpop.f32.mrf.mxu1 }
 0x15e   : > { %v454_v14 = vpop.f32.mrf.mxu0  ;;  %v3062_v15 = vpop.f32.mrf.mxu1 }
 0x164   : > { %v562_v29 = vpop.f32.mrf.mxu0 }
 0x165   : > { %v563_v30 = vadd.f32 %v562_v29, %v449_v24 }
 0x166   : > { %v564_v18 = vpop.f32.mrf.mxu0 }
 0x167   : > { %v565_v31 = vadd.f32 %v564_v18, %v451_v26  ;;  %v1498_v18 = vlaneseq }
 0x168   : > { %v603_v32 = vpop.f32.mrf.mxu1  ;;  %v566_v20 = vpop.f32.mrf.mxu0 }
 0x169   : > { %v604_v33 = vadd.f32 %v603_v32, %v490_v25 }
 0x16a   : > { %v3069_v34 = vpop.f32.mrf.mxu1  ;;  %v567_v35 = vpop.f32.mrf.mxu0 }
 0x16c   : > { %v606_v36 = vpop.f32.mrf.mxu1 }
 0x16d   : > { %v1499_v36 = vshrl.u32 %v1498_v18, 7 }
 0x16e   : > { %v3070_v37 = vpop.f32.mrf.mxu1 }
 0x178   : > { %v677_v38 = vpop.f32.mrf.mxu0  ;;  %v718_v39 = vpop.f32.mrf.mxu1 }
 0x179   : > { %v724_v40 = vadd.f32 %v677_v38, %v563_v30  ;;  %v726_v41 = vadd.f32 %v718_v39, %v604_v33 }
 0x17a   : > { %v679_v42 = vpop.f32.mrf.mxu0  ;;  %v3077_v43 = vpop.f32.mrf.mxu1 }
 0x17b   : > { %v725_v44 = vadd.f32 %v679_v42, %v565_v31 }
 0x17c   : > { %v681_v45 = vpop.f32.mrf.mxu0  ;;  %v721_v46 = vpop.f32.mrf.mxu1 }
 0x17d   : > { %v1500_v46 = vsub.s32 0, %v1499_v36 }
 0x17e   : > { %v682_v47 = vpop.f32.mrf.mxu0  ;;  %v3078_v48 = vpop.f32.mrf.mxu1 }
 0x17f   : > { %v1508_v47 = vsub.s32 2, %v1499_v36  ;;  %v1488_v48 = vpop.permute.xlu0 %1487 }
 0x188   : > { %v795_v49 = vpop.f32.mrf.mxu0  ;;  %v836_v51 = vpop.f32.mrf.mxu1 }
 0x189   : > { %v842_v50 = vadd.f32 %v795_v49, %v724_v40  ;;  %v844_v30 = vadd.f32 %v836_v51, %v726_v41 }
 0x18a   : > { %v797_v52 = vpop.f32.mrf.mxu0  ;;  %v3085_v53 = vpop.f32.mrf.mxu1 }
 0x18b   : > { %v843_v31 = vadd.f32 %v797_v52, %v725_v44  ;;  %v1496_v44 = vld [vmem:[%s3873_s7] sm:$0x7] }
 0x18c   : > { %v799_v54 = vpop.f32.mrf.mxu0  ;;  %v839_v55 = vpop.f32.mrf.mxu1 }
 0x18e   : > { %v800_v56 = vpop.f32.mrf.mxu0  ;;  %v3086_v57 = vpop.f32.mrf.mxu1 }
 0x18f   : > { %v1501_v57 = vrot.slane %v1496_v44, %v1500_v46 }
 0x190   : > { %v924_v58 = vpop.f32.mrf.mxu0  ;;  %v965_v59 = vpop.f32.mrf.mxu1 }
 0x191   : > { %v971_v32 = vadd.f32 %v924_v58, %v842_v50  ;;  %v973_v33 = vadd.f32 %v965_v59, %v844_v30  ;;  %v1504_v50 = vsub.s32 1, %v1499_v36  ;;  %v1509_v58 = vrot.slane %v1496_v44, %v1508_v47 }
 0x192   : > { %v926_v60 = vpop.f32.mrf.mxu0  ;;  %v3093_v61 = vpop.f32.mrf.mxu1  ;;  %v1707_v36 = vstv %s1706_s29 }
 0x193   : > { %v972_v20 = vadd.f32 %v926_v60, %v843_v31 }
 0x194   : > { %v928_v62 = vpop.f32.mrf.mxu0  ;;  %v968_v63 = vpop.f32.mrf.mxu1 }
 0x196   : > { %v929_v1 = vpop.f32.mrf.mxu0  ;;  %v3094_v2 = vpop.f32.mrf.mxu1 }
 0x197   : > { %v1505_v1 = vrot.slane %v1496_v44, %v1504_v50 }
 0x19c   : > { %v1082_v3 = vpop.f32.mrf.mxu0  ;;  %v1123_v4 = vpop.f32.mrf.mxu1 }
 0x19d   : > { %v1129_v34 = vadd.f32 %v1082_v3, %v971_v32  ;;  %v1131_v35 = vadd.f32 %v1123_v4, %v973_v33 }
 0x19e   : > { %v1084_v5 = vpop.f32.mrf.mxu0  ;;  %v3101_v6 = vpop.f32.mrf.mxu1 }
 0x19f   : > { %v1130_v37 = vadd.f32 %v1084_v5, %v972_v20 }
 0x1a0   : > { %v1086_v8 = vpop.f32.mrf.mxu0  ;;  %v1126_v9 = vpop.f32.mrf.mxu1 }
 0x1a2   : > { %v1087_v10 = vpop.f32.mrf.mxu0  ;;  %v3102_v11 = vpop.f32.mrf.mxu1 }
 0x1b0   : > { %v1200_v13 = vpop.f32.mrf.mxu0  ;;  %v1241_v16 = vpop.f32.mrf.mxu1 }
 0x1b1   : > { %v1247_v38 = vadd.f32 %v1200_v13, %v1129_v34  ;;  %v1249_v39 = vadd.f32 %v1241_v16, %v1131_v35  ;;  %v3673_v34 = vld [vmem:[%s3869_s3] sm:$0xf] }
 0x1b2   : > { %v1202_v17 = vpop.f32.mrf.mxu0  ;;  %v3109_v19 = vpop.f32.mrf.mxu1  ;;  %v3677_v35 = vcombine.low %v3673_v34, %v3673_v34 }
 0x1b3   : > { %v1248_v40 = vadd.f32 %v1202_v17, %v1130_v37 }
 0x1b4   : > { %v1204_v21 = vpop.f32.mrf.mxu0  ;;  %v1244_v22 = vpop.f32.mrf.mxu1 }
 0x1b6   : > { %v1205_v23 = vpop.f32.mrf.mxu0  ;;  %v3110_v24 = vpop.f32.mrf.mxu1 }
 0x1c1   : > { %v1318_v25 = vpop.f32.mrf.mxu0  ;;  %v1359_v26 = vpop.f32.mrf.mxu1 }
 0x1c2   : > { %v1365_v42 = vadd.f32 %v1318_v25, %v1247_v38  ;;  %v1367_v43 = vadd.f32 %v1359_v26, %v1249_v39 }
 0x1c3   : > { %v1320_v27 = vpop.f32.mrf.mxu0  ;;  %v3117_v12 = vpop.f32.mrf.mxu1 }
 0x1c4   : > { %v1366_v49 = vadd.f32 %v1320_v27, %v1248_v40 }
 0x1c5   : > { %v1322_v28 = vpop.f32.mrf.mxu0  ;;  %v1362_v14 = vpop.f32.mrf.mxu1 }
 0x1c7   : > { %v1323_v15 = vpop.f32.mrf.mxu0  ;;  %v3118_v29 = vpop.f32.mrf.mxu1 }
 0x1d0   : > { %v1434_v45 = vpop.f32.mrf.mxu0 }
 0x1d1   : > { %v1481_v41 = vadd.f32 %v1434_v45, %v1365_v42  ;;  %v1475_v51 = vpop.f32.mrf.mxu1 }
 0x1d2   : > { %v1483_v52 = vadd.f32 %v1475_v51, %v1367_v43  ;;  %v1436_v53 = vpop.f32.mrf.mxu0 }
 0x1d3   : > { %v1482_v54 = vadd.f32 %v1436_v53, %v1366_v49  ;;  %v3125_v55 = vpop.f32.mrf.mxu1  ;;  %v1490_v56 = vadd.f32 %v1488_v48, %v1481_v41 }
 0x1d4   : > { %v1492_v59 = vadd.f32 %v1488_v48, %v1483_v52  ;;  %v1438_v60 = vpop.f32.mrf.mxu0 }
 0x1d5   : > { %v1491_v61 = vadd.f32 %v1488_v48, %v1482_v54  ;;  %v1493_v62 = vmax.f32 %v1490_v56, 0.0  ;;  %v1478_v63 = vpop.f32.mrf.mxu1 }
 0x1d6   : > { %v1495_v2 = vmax.f32 %v1492_v59, 0.0  ;;  %v1439_v3 = vpop.f32.mrf.mxu0 }
 0x1d7   : > { %v1494_v4 = vmax.f32 %v1491_v61, 0.0  ;;  %v3126_v5 = vpop.f32.mrf.mxu1  ;;  %v3643_v6 = vmul.f32 %v1501_v57, %v1493_v62 }
 0x1d8   : > { %v3645_v8 = vmul.f32 %v1509_v58, %v1495_v2 }
 0x1d9   : > { %v3647_v9 = vmul.f32 %v1505_v1, %v1494_v4  ;;  %v1516_v13 = vpack.c.bf16 %v3643_v6, %v3643_v6  ;;  %v2731_v1 = vld [vmem:[%s3870_s4] sm:$0xff] }
 0x1da   : > { %v1518_v10 = vpack.c.bf16 %v3645_v8, %v3645_v8 }
 0x1db   : > { %v1517_v11 = vpack.c.bf16 %v3647_v9, %v3647_v9  ;;  %v1617_v17 = vsel %vm1615_vm10, %v1516_v13, 0 }
 0x1dc   : > { %3128 = vmatpush3.bf16.xpose.msra.mxu1 %v1518_v10  ;;  %v1623_v16 = vsel %vm1615_vm10, %v1518_v10, 0 }
 0x1dd   : > { %1533 = vmatprep.subr.bf16.mxu0 %v1517_v11  ;;  %1551 = vmatprep.mubr.bf16.mxu0 %v1517_v11 }
 0x1de   : > { %1534 = vmatpush1.bf16.xpose.msra.mxu0 %v1516_v13  ;;  %3133 = vmatprep.subr.bf16.mxu1 %v3281_v0 }
 0x1df   : > { %2953 = vmatprep.subr.msk.bf16.mxu0 %vm1615_vm10, %v1517_v11 }
 0x1e3   : > { %3130 = vmatmul.mubr.bf16.vlgmr.msra.gmra.mxu1 %v1518_v10 }
 0x1e4   : > { %3134 = vmatpush3.bf16.msra.mxu1 %v1623_v16  ;;  %3135 = vmatprep.mubr.msk.bf16.mxu1 %vm3284_vm0, %v3281_v0 }
 0x1e5   : > { %1552 = vmatmul.mubr.bf16.vlgmr.msra.gmra.mxu0 %v1516_v13  ;;  %3139 = vmatprep.subr.bf16.mxu1 %v3281_v0 }
 0x1e6   : > { %1640 = vmatpush1.bf16.msra.mxu0 %v1617_v17  ;;  %1657 = vmatprep.mubr.bf16.mxu0 %v3283_v7 }
 0x2a3   : > { %v1593_v19 = vpop.f32.mrf.mxu1 }
 0x2a5   : > { %v3131_v21 = vpop.f32.mrf.mxu1  ;;  %v1553_v22 = vpop.f32.mrf.mxu0 }
 0x2a6   : > { %v1594_v23 = vadd.f32 %v1593_v19, %v1553_v22 }
 0x2a7   : > { %v1596_v24 = vpop.f32.mrf.mxu1  ;;  %v1555_v25 = vpop.f32.mrf.mxu0 }
 0x2a8   : > { %v1600_v26 = vsel %vm1599_vm11, %v1594_v23, inf }
 0x2a9   : > { %v3132_v27 = vpop.f32.mrf.mxu1  ;;  %1601 = vmin.xlane.f32.xlu1 %v1600_v26  ;;  %v1556_v12 = vpop.f32.mrf.mxu0 }
 0x2ab   : > { %v1557_v28 = vpop.f32.mrf.mxu0 }
 0x2ba   : > { %1957 = vrot.lane.b32.xlu1 %v3677_v35, %s3295_s18 }
 0x332   : > { %v1602_v14 = vpop.xlane.xlu1 %1601 }
 0x333   : > { %v1603_v15 = vsub.f32 %v1602_v14, %v1594_v23 }
 0x335   : > { %v1604_v29 = vmul.f32 1.442695, %v1603_v15 }
 0x336   : > { %v1958_v3 = vpop.permute.xlu1 %1957 }
 0x337   : > { %3267 = vpow2.f32 %v1604_v29 }
 0x344   : > { %v3268_v30 = vpop.eup %3267 }
 0x345   : > { %v1606_v18 = vsel %vm1599_vm11, %v3268_v30, 0.0 }
 0x346   : > { %1607 = vadd.xlane.f32.xlu0 %v1606_v18 }
 0x35c   : > { %1737 = vrot.lane.b32.xlu0 %v3677_v35, %s3296_s24 }
 0x3cf   : > { %v1608_v31 = vpop.xlane.xlu0 %1607 }
 0x3d0   : > { %3269 = vrcp.f32 %v1608_v31 }
 0x3d3   : > { %v1738_v2 = vpop.permute.xlu0 %1737 }
 0x3dd   : > { %v3270_v32 = vpop.eup %3269 }
 0x3de   : > { %v1610_v33 = vmul.f32 %v3270_v32, %v3268_v30 }
 0x3e0   : > { %v1611_v20 = vpack.c.bf16 %v1610_v33, %v1610_v33 }
 0x3e2   : > { %2954 = vmatmul.mubr.msk.bf16.vlgmr.msra.gmra.mxu0 %vm1599_vm11, %v1611_v20  ;;  %3136 = vmatmul.mubr.msk.bf16.vlgmr.msra.gmra.mxu1 %vm1599_vm11, %v1611_v20 }
 0x3e3   : > { %1804 = vmatprep.mubr.bf16.mxu0 %v3283_v7  ;;  %3141 = vmatprep.mubr.msk.bf16.mxu1 %vm3284_vm0, %v3281_v0 }
 0x4a2   : > { %v1659_v37 = vpop.f32.mrf.mxu0  ;;  %v1700_v38 = vpop.f32.mrf.mxu1 }
 0x4a3   : > { %v1708_v39 = vmul.f32 %v1707_v36, %v1659_v37  ;;  %v1710_v40 = vmul.f32 %v1707_v36, %v1700_v38 }
 0x4a4   : > { %v1661_v42 = vpop.f32.mrf.mxu0  ;;  %v3137_v43 = vpop.f32.mrf.mxu1 }
 0x4a5   : > { %v1713_v45 = vadd.f32 %v1710_v40, %v3645_v8  ;;  %v1709_v46 = vmul.f32 %v1707_v36, %v1661_v42  ;;  %v1711_v49 = vadd.f32 %v1708_v39, %v3643_v6 }
 0x4a6   : > { %v1663_v47 = vpop.f32.mrf.mxu0  ;;  %v1703_v48 = vpop.f32.mrf.mxu1 }
 0x4a7   : > { %v3003_v41 = vpack.c.bf16 %v1713_v45, %v1713_v45  ;;  %v1712_v51 = vadd.f32 %v1709_v46, %v3647_v9  ;;  %v3705_v61 = vpack.c.bf16 %v1711_v49, %v1711_v49 }
 0x4a8   : > { %v1664_v44 = vpop.f32.mrf.mxu0  ;;  %v3138_v50 = vpop.f32.mrf.mxu1 }
 0x4a9   : > { %1730 = vst [vmem:[#allocation2 + $0xc] sm:$0xf] %v3003_v41  ;;  %v3002_v52 = vpack.c.bf16 %v1712_v51, %v1711_v49  ;;  %v3712_v63 = vpack.c.bf16 %v1712_v51, %v1712_v51  ;;  %v2191_v48 = vsel %vm1615_vm10, %v3705_v61, 0 }
 0x4ab   : > { %1729 = vst [vmem:[#allocation2 + $0x4] sm:$0xff] %v3002_v52 }
 0x4b0   : > { %v2284_v59 = vld [vmem:[#allocation2 + $0xc] sm:$0xff] }
 0x4b1   : > { %v2983_v60 = vcombine.low %v2284_v59, %v2284_v59  ;;  %v2984_v62 = vcombine.high %v2284_v59, %v2284_v59  ;;  %v3266_v45 = vld [vmem:[#allocation2 + $0xc] ss:$0 sps:$4 sm:$0xff]  }
 0x4b2   : > { %v1732_v53 = vld [vmem:[#allocation2] sm:$0xff]  ;;  %v1733_v56 = vld [vmem:[#allocation2 + $0x8] sm:$0xff]  ;;  %v2197_v49 = vsel %vm1615_vm10, %v3266_v45, 0 }
 0x4b3   : > { %v2960_v54 = vcombine.high %v1732_v53, %v1732_v53  ;;  %v2959_v55 = vcombine.low %v1732_v53, %v1732_v53  ;;  %v2961_v57 = vcombine.low %v1733_v56, %v1733_v56  ;;  %v2962_v58 = vcombine.high %v1733_v56, %v1733_v56 }
 0x4b5   : > { %1751 = vrot.lane.b32.xlu0 %v2960_v54, %s3282_s16  ;;  %1749 = vrot.lane.b32.xlu1 %v2959_v55, %s3282_s16 }
 0x4b9   : > { %1855 = vrot.lane.b32.xlu0 %v2960_v54, %s3285_s19  ;;  %1753 = vrot.lane.b32.xlu1 %v2961_v57, %s3282_s16 }
 0x4bd   : > { %1859 = vrot.lane.b32.xlu0 %v2962_v58, %s3285_s19  ;;  %1755 = vrot.lane.b32.xlu1 %v2962_v58, %s3282_s16  ;;  %s3298_s16 = smov 88  }
 0x4c1   : > { %1961 = vrot.lane.b32.xlu0 %v2960_v54, %s3287_s21  ;;  %1853 = vrot.lane.b32.xlu1 %v2959_v55, %s3285_s19 }
 0x4c5   : > { %1965 = vrot.lane.b32.xlu0 %v2962_v58, %s3287_s21  ;;  %1857 = vrot.lane.b32.xlu1 %v2961_v57, %s3285_s19  ;;  %s3299_s19 = smov 80  }
 0x4c9   : > { %2068 = vrot.lane.b32.xlu0 %v2959_v55, %s3288_s22  ;;  %1959 = vrot.lane.b32.xlu1 %v2959_v55, %s3287_s21 }
 0x4cd   : > { %2072 = vrot.lane.b32.xlu0 %v2961_v57, %s3288_s22  ;;  %1963 = vrot.lane.b32.xlu1 %v2961_v57, %s3287_s21 }
 0x4d1   : > { %2066 = vrot.lane.b32.xlu0 %v3677_v35, %s3297_s30  ;;  %2070 = vrot.lane.b32.xlu1 %v2960_v54, %s3288_s22 }
 0x4d5   : > { %2301 = vrot.lane.b32.xlu0 %v2983_v60, %s3291_s25  ;;  %2074 = vrot.lane.b32.xlu1 %v2962_v58, %s3288_s22 }
 0x4d9   : > { %2285 = vrot.lane.b32.xlu0 %v3677_v35, %s3298_s16  ;;  %2177 = vrot.lane.b32.xlu1 %v3677_v35, %s3286_s20  ;;  %s3300_s20 = smov 72  }
 0x4dd   : > { %2297 = vrot.lane.b32.xlu0 %v3705_v61, %s3291_s25  ;;  %2303 = vrot.lane.b32.xlu1 %v2984_v62, %s3291_s25 }
 0x4e1   : > { %2412 = vrot.lane.b32.xlu0 %v2984_v62, %s3292_s26  ;;  %2410 = vrot.lane.b32.xlu1 %v2983_v60, %s3292_s26 }
 0x4e5   : > { %2408 = vrot.lane.b32.xlu0 %v3712_v63, %s3292_s26  ;;  %2299 = vrot.lane.b32.xlu1 %v3712_v63, %s3291_s25 }
 0x4e9   : > { %2519 = vrot.lane.b32.xlu0 %v2983_v60, %s3293_s27  ;;  %2404 = vrot.lane.b32.xlu1 %v3677_v35, %s3299_s19 }
 0x4ed   : > { %2515 = vrot.lane.b32.xlu0 %v3705_v61, %s3293_s27  ;;  %2406 = vrot.lane.b32.xlu1 %v3705_v61, %s3292_s26 }
 0x4f1   : > { %2513 = vrot.lane.b32.xlu0 %v3677_v35, %s3300_s20  ;;  %2521 = vrot.lane.b32.xlu1 %v2984_v62, %s3293_s27 }
 0x4f5   : > { %2626 = vrot.lane.b32.xlu0 %v3712_v63, %s3294_s28  ;;  %2517 = vrot.lane.b32.xlu1 %v3712_v63, %s3293_s27 }
 0x4f9   : > { %2630 = vrot.lane.b32.xlu0 %v2984_v62, %s3294_s28  ;;  %2624 = vrot.lane.b32.xlu1 %v3705_v61, %s3294_s28 }
 0x4fd   : > { %2734 = vperm.xlu0 %3229, %v2731_v1   ;;  %2628 = vrot.lane.b32.xlu1 %v2983_v60, %s3294_s28  ;;  %s3200_s28 = smul.u32 24, %s3877_s12 }
 0x4ff   : > { %s333_s13 = scalar_lea.vmem %s3875_s9, %s3200_s28 }
 0x501   : > { %2622 = vrot.lane.b32.xlu1 %v3677_v35, %s3289_s23 }
 0x527   : > { %v1752_v4 = vpop.permute.xlu0 %1751  ;;  %v1750_v5 = vpop.permute.xlu1 %1749 }
 0x528   : > { %v1757_v6 = vsel %vm398_vm1, %v1750_v5, %v1752_v4 }
 0x529   : > { %v1764_v11 = vsel %vm1615_vm10, %v1757_v6, 0 }
 0x52b   : > { %v1856_v8 = vpop.permute.xlu0 %1855  ;;  %v1754_v9 = vpop.permute.xlu1 %1753 }
 0x52c   : > { %v1758_v10 = vsel %vm398_vm1, %v1752_v4, %v1754_v9 }
 0x52d   : > { %2963 = vmatprep.subr.msk.bf16.mxu0 %vm1615_vm10, %v1758_v10 }
 0x52e   : > { %1787 = vmatpush1.bf16.msra.mxu0 %v1764_v11 }
 0x52f   : > { %v1860_v13 = vpop.permute.xlu0 %1859  ;;  %v1756_v16 = vpop.permute.xlu1 %1755 }
 0x530   : > { %v1759_v17 = vsel %vm398_vm1, %v1754_v9, %v1756_v16 }
 0x531   : > { %v1770_v19 = vsel %vm1615_vm10, %v1759_v17, 0  ;;  %2964 = vmatmul.mubr.msk.bf16.vlgmr.msra.gmra.mxu0 %vm1599_vm11, %v1738_v2 }
 0x532   : > { %3140 = vmatpush3.bf16.msra.mxu1 %v1770_v19  ;;  %1908 = vmatprep.mubr.bf16.mxu0 %v3283_v7 }
 0x533   : > { %v1962_v21 = vpop.permute.xlu0 %1961  ;;  %v1854_v22 = vpop.permute.xlu1 %1853  ;;  %3145 = vmatprep.subr.bf16.mxu1 %v3281_v0 }
 0x534   : > { %v1861_v23 = vsel %vm512_vm2, %v1854_v22, %v1856_v8 }
 0x535   : > { %3142 = vmatmul.mubr.msk.bf16.vlgmr.msra.gmra.mxu1 %vm1599_vm11, %v1738_v2  ;;  %v1868_v12 = vsel %vm1615_vm10, %v1861_v23, 0 }
 0x536   : > { %3147 = vmatprep.mubr.msk.bf16.mxu1 %vm3284_vm0, %v3281_v0 }
 0x537   : > { %v1966_v24 = vpop.permute.xlu0 %1965  ;;  %v1858_v25 = vpop.permute.xlu1 %1857 }
 0x538   : > { %v1862_v26 = vsel %vm512_vm2, %v1856_v8, %v1858_v25  ;;  %v1863_v27 = vsel %vm512_vm2, %v1858_v25, %v1860_v13 }
 0x539   : > { %v1874_v28 = vsel %vm1615_vm10, %v1863_v27, 0  ;;  %2966 = vmatprep.subr.msk.bf16.mxu0 %vm1615_vm10, %v1862_v26 }
 0x53a   : > { %1891 = vmatpush1.bf16.msra.mxu0 %v1868_v12  ;;  %3146 = vmatpush3.bf16.msra.mxu1 %v1874_v28  ;;  %v2747_v28 = vld [vmem:[%s3872_s6] sm:$0xff] }
 0x53b   : > { %v2069_v14 = vpop.permute.xlu0 %2068  ;;  %v1960_v15 = vpop.permute.xlu1 %1959  ;;  %3151 = vmatprep.subr.bf16.mxu1 %v3281_v0  ;;  %2750 = vperm.xlu1 %3230, %v2747_v28  }
 0x53c   : > { %v1967_v29 = vsel %vm627_vm4, %v1960_v15, %v1962_v21 }
 0x53d   : > { %2967 = vmatmul.mubr.msk.bf16.vlgmr.msra.gmra.mxu0 %vm1599_vm11, %v3673_v34  ;;  %3148 = vmatmul.mubr.msk.bf16.vlgmr.msra.gmra.mxu1 %vm1599_vm11, %v3673_v34  ;;  %v1974_v33 = vsel %vm1615_vm10, %v1967_v29, 0 }
 0x53e   : > { %2014 = vmatprep.mubr.bf16.mxu0 %v3283_v7  ;;  %3153 = vmatprep.mubr.msk.bf16.mxu1 %vm3284_vm0, %v3281_v0 }
 0x53f   : > { %v2073_v30 = vpop.permute.xlu0 %2072  ;;  %v1964_v18 = vpop.permute.xlu1 %1963 }
 0x540   : > { %v1968_v31 = vsel %vm627_vm4, %v1962_v21, %v1964_v18  ;;  %v1969_v32 = vsel %vm627_vm4, %v1964_v18, %v1966_v24 }
 0x541   : > { %v1980_v20 = vsel %vm1615_vm10, %v1969_v32, 0  ;;  %2969 = vmatprep.subr.msk.bf16.mxu0 %vm1615_vm10, %v1968_v31 }
 0x542   : > { %1997 = vmatpush1.bf16.msra.mxu0 %v1974_v33  ;;  %3152 = vmatpush3.bf16.msra.mxu1 %v1980_v20 }
 0x543   : > { %v2067_v34 = vpop.permute.xlu0 %2066  ;;  %v2071_v35 = vpop.permute.xlu1 %2070  ;;  %3157 = vmatprep.subr.bf16.mxu1 %v3281_v0 }
 0x544   : > { %v2076_v36 = vsel %vm745_vm5, %v2069_v14, %v2071_v35  ;;  %v2077_v37 = vsel %vm745_vm5, %v2071_v35, %v2073_v30 }
 0x545   : > { %v2083_v38 = vsel %vm1615_vm10, %v2076_v36, 0  ;;  %2970 = vmatmul.mubr.msk.bf16.vlgmr.msra.gmra.mxu0 %vm1599_vm11, %v1958_v3  ;;  %3154 = vmatmul.mubr.msk.bf16.vlgmr.msra.gmra.mxu1 %vm1599_vm11, %v1958_v3 }
 0x546   : > { %2972 = vmatprep.subr.msk.bf16.mxu0 %vm1615_vm10, %v2077_v37  ;;  %2123 = vmatprep.mubr.bf16.mxu0 %v3283_v7 }
 0x547   : > { %2106 = vmatpush1.bf16.msra.mxu0 %v2083_v38  ;;  %v2302_v39 = vpop.permute.xlu0 %2301  ;;  %v2075_v40 = vpop.permute.xlu1 %2074  ;;  %3159 = vmatprep.mubr.msk.bf16.mxu1 %vm3284_vm0, %v3281_v0 }
 0x548   : > { %2978 = vmatprep.subr.msk.bf16.mxu0 %vm1615_vm10, %v3712_v63  ;;  %v2078_v42 = vsel %vm745_vm5, %v2073_v30, %v2075_v40 }
 0x549   : > { %v2089_v43 = vsel %vm1615_vm10, %v2078_v42, 0 }
 0x54a   : > { %3158 = vmatpush3.bf16.msra.mxu1 %v2089_v43 }
 0x54b   : > { %v2286_v46 = vpop.permute.xlu0 %2285  ;;  %v2178_v47 = vpop.permute.xlu1 %2177  ;;  %3163 = vmatprep.subr.bf16.mxu1 %v3281_v0 }
 0x54d   : > { %2973 = vmatmul.mubr.msk.bf16.vlgmr.msra.gmra.mxu0 %vm1599_vm11, %v2067_v34  ;;  %3160 = vmatmul.mubr.msk.bf16.vlgmr.msra.gmra.mxu1 %vm1599_vm11, %v2067_v34 }
 0x54e   : > { %2214 = vmatpush1.bf16.msra.mxu0 %v2191_v48  ;;  %3164 = vmatpush3.bf16.msra.mxu1 %v2197_v49 }
 0x54f   : > { %v2298_v41 = vpop.permute.xlu0 %2297  ;;  %v2304_v51 = vpop.permute.xlu1 %2303  ;;  %2231 = vmatprep.mubr.bf16.mxu0 %v3283_v7  ;;  %3165 = vmatprep.mubr.msk.bf16.mxu1 %vm3284_vm0, %v3281_v0 }
 0x550   : > { %3169 = vmatprep.subr.bf16.mxu1 %v3281_v0  ;;  %v2307_v44 = vsel %vm1032_vm6, %v2302_v39, %v2304_v51 }
 0x551   : > { %v2318_v53 = vsel %vm1615_vm10, %v2307_v44, 0 }
 0x553   : > { %v2413_v50 = vpop.permute.xlu0 %2412  ;;  %v2411_v52 = vpop.permute.xlu1 %2410 }
 0x554   : > { %v2416_v59 = vsel %vm1150_vm7, %v2411_v52, %v2413_v50 }
 0x555   : > { %2979 = vmatmul.mubr.msk.bf16.vlgmr.msra.gmra.mxu0 %vm1599_vm11, %v2178_v47  ;;  %3166 = vmatmul.mubr.msk.bf16.vlgmr.msra.gmra.mxu1 %vm1599_vm11, %v2178_v47  ;;  %v2427_v63 = vsel %vm1615_vm10, %v2416_v59, 0 }
 0x556   : > { %3170 = vmatpush3.bf16.msra.mxu1 %v2318_v53  ;;  %2352 = vmatprep.mubr.bf16.mxu0 %v3283_v7 }
 0x557   : > { %v2409_v54 = vpop.permute.xlu0 %2408  ;;  %v2300_v55 = vpop.permute.xlu1 %2299  ;;  %3171 = vmatprep.mubr.msk.bf16.mxu1 %vm3284_vm0, %v3281_v0  ;;  %3175 = vmatprep.subr.bf16.mxu1 %v3281_v0 }
 0x558   : > { %v2305_v56 = vsel %vm1032_vm6, %v2298_v41, %v2300_v55  ;;  %v2306_v57 = vsel %vm1032_vm6, %v2300_v55, %v2302_v39  ;;  %v2415_v60 = vsel %vm1150_vm7, %v2409_v54, %v2411_v52 }
 0x559   : > { %v2312_v58 = vsel %vm1615_vm10, %v2305_v56, 0  ;;  %2985 = vmatprep.subr.msk.bf16.mxu0 %vm1615_vm10, %v2306_v57 }
 0x55a   : > { %2335 = vmatpush1.bf16.msra.mxu0 %v2312_v58 }
 0x55b   : > { %v2520_v61 = vpop.permute.xlu0 %2519  ;;  %2988 = vmatprep.subr.msk.bf16.mxu0 %vm1615_vm10, %v2415_v60  ;;  %v2405_v62 = vpop.permute.xlu1 %2404 }
 0x55d   : > { %2986 = vmatmul.mubr.msk.bf16.vlgmr.msra.gmra.mxu0 %vm1599_vm11, %v2286_v46  ;;  %3172 = vmatmul.mubr.msk.bf16.vlgmr.msra.gmra.mxu1 %vm1599_vm11, %v2286_v46 }
 0x55e   : > { %3176 = vmatpush3.bf16.msra.mxu1 %v2427_v63  ;;  %2461 = vmatprep.mubr.bf16.mxu0 %v3283_v7 }
 0x55f   : > { %v2516_v1 = vpop.permute.xlu0 %2515  ;;  %v2407_v2 = vpop.permute.xlu1 %2406  ;;  %3177 = vmatprep.mubr.msk.bf16.mxu1 %vm3284_vm0, %v3281_v0  ;;  %3181 = vmatprep.subr.bf16.mxu1 %v3281_v0 }
 0x560   : > { %v2414_v3 = vsel %vm1150_vm7, %v2407_v2, %v2409_v54 }
 0x561   : > { %v2421_v4 = vsel %vm1615_vm10, %v2414_v3, 0 }
 0x562   : > { %2444 = vmatpush1.bf16.msra.mxu0 %v2421_v4 }
 0x563   : > { %v2514_v5 = vpop.permute.xlu0 %2513  ;;  %v2522_v6 = vpop.permute.xlu1 %2521 }
 0x564   : > { %v2525_v8 = vsel %vm1268_vm8, %v2520_v61, %v2522_v6 }
 0x565   : > { %v2536_v9 = vsel %vm1615_vm10, %v2525_v8, 0  ;;  %2989 = vmatmul.mubr.msk.bf16.vlgmr.msra.gmra.mxu0 %vm1599_vm11, %v2405_v62  ;;  %3178 = vmatmul.mubr.msk.bf16.vlgmr.msra.gmra.mxu1 %vm1599_vm11, %v2405_v62 }
 0x566   : > { %3182 = vmatpush3.bf16.msra.mxu1 %v2536_v9  ;;  %2570 = vmatprep.mubr.bf16.mxu0 %v3283_v7 }
 0x567   : > { %v2518_v10 = vpop.permute.xlu1 %2517  ;;  %3183 = vmatprep.mubr.msk.bf16.mxu1 %vm3284_vm0, %v3281_v0  ;;  %3187 = vmatprep.subr.bf16.mxu1 %v3281_v0  ;;  %v2627_v16 = vpop.permute.xlu0 %2626 }
 0x568   : > { %v2523_v11 = vsel %vm1268_vm8, %v2516_v1, %v2518_v10  ;;  %v2524_v13 = vsel %vm1268_vm8, %v2518_v10, %v2520_v61 }
 0x569   : > { %v2530_v17 = vsel %vm1615_vm10, %v2523_v11, 0  ;;  %2991 = vmatprep.subr.msk.bf16.mxu0 %vm1615_vm10, %v2524_v13 }
 0x56a   : > { %2553 = vmatpush1.bf16.msra.mxu0 %v2530_v17 }
 0x56b   : > { %v2625_v19 = vpop.permute.xlu1 %2624  ;;  %v2631_v22 = vpop.permute.xlu0 %2630 }
 0x56c   : > { %v2632_v21 = vsel %vm1384_vm9, %v2625_v19, %v2627_v16 }
 0x56d   : > { %2992 = vmatmul.mubr.msk.bf16.vlgmr.msra.gmra.mxu0 %vm1599_vm11, %v2514_v5  ;;  %3184 = vmatmul.mubr.msk.bf16.vlgmr.msra.gmra.mxu1 %vm1599_vm11, %v2514_v5  ;;  %v2639_v26 = vsel %vm1615_vm10, %v2632_v21, 0 }
 0x56e   : > { %2679 = vmatprep.mubr.bf16.mxu0 %v3283_v7  ;;  %3189 = vmatprep.mubr.msk.bf16.mxu1 %vm3284_vm0, %v3281_v0 }
 0x56f   : > { %v2629_v23 = vpop.permute.xlu1 %2628 }
 0x570   : > { %v2633_v24 = vsel %vm1384_vm9, %v2627_v16, %v2629_v23  ;;  %v2634_v25 = vsel %vm1384_vm9, %v2629_v23, %v2631_v22 }
 0x571   : > { %v2645_v27 = vsel %vm1615_vm10, %v2634_v25, 0  ;;  %2994 = vmatprep.subr.msk.bf16.mxu0 %vm1615_vm10, %v2633_v24 }
 0x572   : > { %2662 = vmatpush1.bf16.msra.mxu0 %v2639_v26  ;;  %3188 = vmatpush3.bf16.msra.mxu1 %v2645_v27 }
 0x573   : > { %v2623_v12 = vpop.permute.xlu1 %2622  ;;  %3193 = vmatprep.subr.bf16.mxu1 %v3281_v0 }
 0x575   : > { %2995 = vmatmul.mubr.msk.bf16.vlgmr.msra.gmra.mxu0 %vm1599_vm11, %v2623_v12  ;;  %3190 = vmatmul.mubr.msk.bf16.vlgmr.msra.gmra.mxu1 %vm1599_vm11, %v2623_v12 }
 0x576   : > { %3195 = vmatprep.mubr.msk.bf16.mxu1 %vm3284_vm0, %v3281_v0  ;;  %2797 = vmatprep.mubr.bf16.mxu0 %v3283_v7 }
 0x5f1   : > { %v1806_v14 = vpop.f32.mrf.mxu0 }
 0x5f3   : > { %v1808_v15 = vpop.f32.mrf.mxu0 }
 0x5f5   : > { %v1810_v29 = vpop.f32.mrf.mxu0  ;;  %v1847_v30 = vpop.f32.mrf.mxu1 }
 0x5f7   : > { %v1811_v18 = vpop.f32.mrf.mxu0  ;;  %v3143_v31 = vpop.f32.mrf.mxu1 }
 0x5f9   : > { %v1850_v32 = vpop.f32.mrf.mxu1 }
 0x5fb   : > { %v3144_v33 = vpop.f32.mrf.mxu1 }
 0x5fd   : > { %v1910_v20 = vpop.f32.mrf.mxu0  ;;  %v1951_v34 = vpop.f32.mrf.mxu1 }
 0x5fe   : > { %v1911_v16 = vadd.f32 %v1910_v20, %v1806_v14  ;;  %v1952_v17 = vadd.f32 %v1951_v34, %v1847_v30 }
 0x5ff   : > { %v1912_v35 = vpop.f32.mrf.mxu0  ;;  %v3149_v36 = vpop.f32.mrf.mxu1 }
 0x600   : > { %v1913_v22 = vadd.f32 %v1912_v35, %v1808_v15 }
 0x601   : > { %v1914_v0 = vpop.f32.mrf.mxu0  ;;  %v1954_v37 = vpop.f32.mrf.mxu1 }
 0x603   : > { %v1915_v7 = vpop.f32.mrf.mxu0  ;;  %v3150_v38 = vpop.f32.mrf.mxu1 }
 0x605   : > { %v2016_v39 = vpop.f32.mrf.mxu0  ;;  %v2057_v40 = vpop.f32.mrf.mxu1 }
 0x606   : > { %v2063_v23 = vadd.f32 %v2016_v39, %v1911_v16  ;;  %v2065_v24 = vadd.f32 %v2057_v40, %v1952_v17 }
 0x607   : > { %v2018_v42 = vpop.f32.mrf.mxu0  ;;  %v3155_v43 = vpop.f32.mrf.mxu1 }
 0x608   : > { %v2064_v27 = vadd.f32 %v2018_v42, %v1913_v22 }
 0x609   : > { %v2020_v45 = vpop.f32.mrf.mxu0  ;;  %v2060_v46 = vpop.f32.mrf.mxu1 }
 0x60b   : > { %v2021_v47 = vpop.f32.mrf.mxu0  ;;  %v3156_v48 = vpop.f32.mrf.mxu1 }
 0x60c   : > { %v2735_v47 = vpop.permute.xlu0 %2734 }
 0x60d   : > { %v2125_v49 = vpop.f32.mrf.mxu0  ;;  %v2166_v41 = vpop.f32.mrf.mxu1 }
 0x60e   : > { %v2172_v12 = vadd.f32 %v2125_v49, %v2063_v23  ;;  %v2174_v28 = vadd.f32 %v2166_v41, %v2065_v24 }
 0x60f   : > { %v2127_v51 = vpop.f32.mrf.mxu0  ;;  %v3161_v44 = vpop.f32.mrf.mxu1 }
 0x610   : > { %v2173_v31 = vadd.f32 %v2127_v51, %v2064_v27 }
 0x611   : > { %v2129_v50 = vpop.f32.mrf.mxu0  ;;  %v2169_v52 = vpop.f32.mrf.mxu1 }
 0x613   : > { %v2130_v53 = vpop.f32.mrf.mxu0  ;;  %v3162_v54 = vpop.f32.mrf.mxu1 }
 0x615   : > { %v2233_v55 = vpop.f32.mrf.mxu0  ;;  %v2274_v56 = vpop.f32.mrf.mxu1 }
 0x616   : > { %v2280_v32 = vadd.f32 %v2233_v55, %v2172_v12  ;;  %v2282_v33 = vadd.f32 %v2274_v56, %v2174_v28 }
 0x617   : > { %v2235_v57 = vpop.f32.mrf.mxu0  ;;  %v3167_v58 = vpop.f32.mrf.mxu1 }
 0x618   : > { %v2281_v37 = vadd.f32 %v2235_v57, %v2173_v31 }
 0x619   : > { %v2237_v59 = vpop.f32.mrf.mxu0  ;;  %v2277_v60 = vpop.f32.mrf.mxu1 }
 0x61b   : > { %v2238_v61 = vpop.f32.mrf.mxu0  ;;  %v3168_v62 = vpop.f32.mrf.mxu1 }
 0x61d   : > { %v2354_v63 = vpop.f32.mrf.mxu0  ;;  %v2395_v1 = vpop.f32.mrf.mxu1 }
 0x61e   : > { %v2401_v14 = vadd.f32 %v2354_v63, %v2280_v32  ;;  %v2403_v30 = vadd.f32 %v2395_v1, %v2282_v33 }
 0x61f   : > { %v2356_v2 = vpop.f32.mrf.mxu0  ;;  %v3173_v3 = vpop.f32.mrf.mxu1 }
 0x620   : > { %v2402_v15 = vadd.f32 %v2356_v2, %v2281_v37  ;;  %v2743_v3 = vld [vmem:[%s3871_s5] sm:$0xf] }
 0x621   : > { %v2358_v4 = vpop.f32.mrf.mxu0  ;;  %v2398_v5 = vpop.f32.mrf.mxu1 }
 0x622   : > { %v2751_v5 = vpop.permute.xlu1 %2750 }
 0x623   : > { %v2359_v6 = vpop.f32.mrf.mxu0  ;;  %v3174_v8 = vpop.f32.mrf.mxu1 }
 0x625   : > { %v2463_v9 = vpop.f32.mrf.mxu0  ;;  %v2504_v10 = vpop.f32.mrf.mxu1 }
 0x626   : > { %v2510_v35 = vadd.f32 %v2463_v9, %v2401_v14  ;;  %v2512_v7 = vadd.f32 %v2504_v10, %v2403_v30 }
 0x627   : > { %v2465_v11 = vpop.f32.mrf.mxu0  ;;  %v3179_v13 = vpop.f32.mrf.mxu1 }
 0x628   : > { %v2511_v40 = vadd.f32 %v2465_v11, %v2402_v15 }
 0x629   : > { %v2467_v19 = vpop.f32.mrf.mxu0  ;;  %v2507_v21 = vpop.f32.mrf.mxu1 }
 0x62b   : > { %v2468_v25 = vpop.f32.mrf.mxu0  ;;  %v3180_v26 = vpop.f32.mrf.mxu1 }
 0x62d   : > { %v2572_v29 = vpop.f32.mrf.mxu0  ;;  %v2613_v18 = vpop.f32.mrf.mxu1 }
 0x62e   : > { %v2619_v42 = vadd.f32 %v2572_v29, %v2510_v35  ;;  %v2621_v43 = vadd.f32 %v2613_v18, %v2512_v7 }
 0x62f   : > { %v2574_v36 = vpop.f32.mrf.mxu0  ;;  %v3185_v0 = vpop.f32.mrf.mxu1 }
 0x630   : > { %v2620_v48 = vadd.f32 %v2574_v36, %v2511_v40 }
 0x631   : > { %v2576_v20 = vpop.f32.mrf.mxu0  ;;  %v2616_v34 = vpop.f32.mrf.mxu1 }
 0x633   : > { %v2577_v38 = vpop.f32.mrf.mxu0  ;;  %v3186_v39 = vpop.f32.mrf.mxu1 }
 0x635   : > { %v2681_v45 = vpop.f32.mrf.mxu0  ;;  %v2722_v46 = vpop.f32.mrf.mxu1 }
 0x636   : > { %v2728_v49 = vadd.f32 %v2681_v45, %v2619_v42  ;;  %v2730_v41 = vadd.f32 %v2722_v46, %v2621_v43 }
 0x637   : > { %v2683_v51 = vpop.f32.mrf.mxu0  ;;  %v3191_v44 = vpop.f32.mrf.mxu1 }
 0x638   : > { %v2737_v50 = vadd.f32 %v2735_v47, %v2728_v49  ;;  %v2739_v52 = vadd.f32 %v2735_v47, %v2730_v41  ;;  %v2729_v53 = vadd.f32 %v2683_v51, %v2620_v48 }
 0x639   : > { %v2685_v54 = vpop.f32.mrf.mxu0  ;;  %v2725_v55 = vpop.f32.mrf.mxu1 }
 0x63a   : > { %v2740_v56 = vmax.f32 %v2737_v50, 0.0  ;;  %v2742_v57 = vmax.f32 %v2739_v52, 0.0  ;;  %v2738_v58 = vadd.f32 %v2735_v47, %v2729_v53 }
 0x63b   : > { %v2686_v59 = vpop.f32.mrf.mxu0  ;;  %v3192_v60 = vpop.f32.mrf.mxu1 }
 0x63c   : > { %v2744_v61 = vpack.c.bf16 %v2740_v56, %v2740_v56  ;;  %v2746_v62 = vpack.c.bf16 %v2742_v57, %v2742_v57  ;;  %v2741_v63 = vmax.f32 %v2738_v58, 0.0 }
 0x63e   : > { %v2745_v1 = vpack.c.bf16 %v2741_v63, %v2741_v63  ;;  %v2763_v2 = vsel %vm1615_vm10, %v2746_v62, 0  ;;  %v2757_v4 = vsel %vm1615_vm10, %v2744_v61, 0 }
 0x63f   : > { %3194 = vmatpush3.bf16.msra.mxu1 %v2763_v2 }
 0x640   : > { %2997 = vmatprep.subr.msk.bf16.mxu0 %vm1615_vm10, %v2745_v1 }
 0x641   : > { %2780 = vmatpush1.bf16.msra.mxu0 %v2757_v4 }
 0x642   : > { %3196 = vmatmul.mubr.msk.bf16.vlgmr.msra.gmra.mxu1 %vm1599_vm11, %v2743_v3 }
 0x644   : > { %2998 = vmatmul.mubr.msk.bf16.vlgmr.msra.gmra.mxu0 %vm1599_vm11, %v2743_v3 }
 0x702   : > { %v2840_v6 = vpop.f32.mrf.mxu1 }
 0x703   : > { %v2841_v8 = vadd.f32 %v2840_v6, %v2751_v5 }
 0x704   : > { %v2799_v9 = vpop.f32.mrf.mxu0  ;;  %v3197_v10 = vpop.f32.mrf.mxu1 }
 0x705   : > { %v2800_v11 = vadd.f32 %v2799_v9, %v2751_v5  ;;  %2848 = vst [vmem:[%s333_s13 + $0x10] sm:$0xff] %v2841_v8 }
 0x706   : > { %v2801_v13 = vpop.f32.mrf.mxu0  ;;  %v2843_v16 = vpop.f32.mrf.mxu1 }
 0x707   : > { %v2802_v17 = vadd.f32 %v2801_v13, %v2751_v5  ;;  %2846 = vst [vmem:[%s333_s13] sm:$0xff] %v2800_v11 }
 0x708   : > { %v2803_v19 = vpop.f32.mrf.mxu0  ;;  %v3198_v21 = vpop.f32.mrf.mxu1 }
 0x709   : > { %2847 = vst [vmem:[%s333_s13 + $0x8] sm:$0xff] %v2802_v17 }
 0x70a   : > { %v2804_v22 = vpop.f32.mrf.mxu0 }
 0x70b PF: > { %s20_s11 = sadd.s32 1, %s3279_s11  }
 0x70c   : > { %p17_p4 = scmp.ge.s32.totalorder %s20_s11, 4  }
 0x70e   :  { %19 = sbr.rel (!%p17_p4) target bundleno = 2 (0x2), region = 86 }

</bundles_post_ra>
